<compile_context>
chip_gen: v7x
topology: tpu7x:2x2x1
jax: 0.10.0
libtpu: 0.0.40
codegen_flags: <defaults>
</compile_context>

<pallas_src>
import math

import jax
import jax.numpy as jnp
from jax.experimental import pallas as pl
from jax.experimental.pallas import tpu as pltpu


# ----------------------------------------------------------------------------- #
# Shared helper: Gauss 3-mult complex matmul (bf16 operands, f32 accumulation).
# ----------------------------------------------------------------------------- #
def _gauss_dot(ar, ai, as_, br, bi, bs):
    t1 = jnp.dot(ar, br, preferred_element_type=jnp.float32)
    t2 = jnp.dot(ai, bi, preferred_element_type=jnp.float32)
    t3 = jnp.dot(as_, bs, preferred_element_type=jnp.float32)
    return t1 - t2, t3 - t1 - t2   # real, imag


# ----------------------------------------------------------------------------- #
# Pass 1: per-coil ifft2c + sens_reduce accumulation + regularizer MLP finalize.
# grid = (B, C); C is the reduction ("arbitrary") axis.
# ----------------------------------------------------------------------------- #
def _sens_reduce_model_kernel(
    cur_r_ref, cur_i_ref,            # (1, 1, H, W) bf16 current k-space
    sens_r_ref, sens_i_ref,          # (1, 1, H, W) bf16 sensitivity maps
    ih_r_ref, ih_i_ref, ih_s_ref,    # (H, H) bf16 centered inverse DFT (rows)
    iw_r_ref, iw_i_ref, iw_s_ref,    # (W, W) bf16 centered inverse DFT^T (cols)
    w1_ref, b1_ref, w2_ref, b2_ref,  # regularizer MLP params (SMEM, f32)
    m_r_ref, m_i_ref,                # (1, H, W) f32 outputs (reduced image -> model out)
):
    f32, bf16 = jnp.float32, jnp.bfloat16
    c = pl.program_id(1)
    last_c = pl.num_programs(1) - 1
    hid = w1_ref.shape[1]

    @pl.when(c == 0)
    def _init():
        m_r_ref[...] = jnp.zeros_like(m_r_ref)
        m_i_ref[...] = jnp.zeros_like(m_i_ref)

    # ---- ifft2c of this coil's k-space: rows (H), then columns (W) ----------- #
    kr = cur_r_ref[0, 0]                                   # (H, W) bf16
    ki = cur_i_ref[0, 0]
    xr, xi = _gauss_dot(ih_r_ref[...], ih_i_ref[...], ih_s_ref[...],
                        kr, ki, kr + ki)                   # (H, W) f32
    xrb, xib = xr.astype(bf16), xi.astype(bf16)
    yr, yi = _gauss_dot(xrb, xib, xrb + xib,
                        iw_r_ref[...], iw_i_ref[...], iw_s_ref[...])

    # ---- sens_reduce: accumulate img * conj(sens) into the output block ------ #
    sr = sens_r_ref[0, 0].astype(f32)
    si = sens_i_ref[0, 0].astype(f32)
    m_r_ref[0] += yr * sr + yi * si
    m_i_ref[0] += yi * sr - yr * si

    # ---- regularizer "model": per-pixel 2 -> HID -> 2 MLP at finalize -------- #
    # TODO(synk): stand-in for the reference NormUnet regularizer.
    @pl.when(c == last_c)
    def _finalize():
        red_r = m_r_ref[0]
        red_i = m_i_ref[0]
        mr = jnp.full(red_r.shape, b2_ref[0], f32)
        mi = jnp.full(red_r.shape, b2_ref[1], f32)
        for k in range(hid):
            hk = jnp.maximum(
                red_r * w1_ref[0, k] + red_i * w1_ref[1, k] + b1_ref[k], 0.0)
            mr = mr + hk * w2_ref[k, 0]
            mi = mi + hk * w2_ref[k, 1]
        m_r_ref[0] = mr
        m_i_ref[0] = mi


# ----------------------------------------------------------------------------- #
# Pass 2: per-coil sens_expand (fft2c) + soft data consistency.
# grid = (B, C), both axes "parallel".
# ----------------------------------------------------------------------------- #
def _sens_expand_dc_kernel(
    m_r_ref, m_i_ref,                # (1, H, W) f32 regularized image
    sens_r_ref, sens_i_ref,          # (1, 1, H, W) bf16
    cur_r_ref, cur_i_ref,            # (1, 1, H, W) f32 current k-space
    ref_r_ref, ref_i_ref,            # (1, 1, H, W) f32 reference k-space
    mask_dcw_ref,                    # (1, W) f32  (mask * dc_weight)
    fh_r_ref, fh_i_ref, fh_s_ref,    # (H, H) bf16 centered forward DFT (rows)
    fw_r_ref, fw_i_ref, fw_s_ref,    # (W, W) bf16 centered forward DFT^T (cols)
    out_r_ref, out_i_ref,            # (1, 1, H, W) f32 outputs
):
    f32, bf16 = jnp.float32, jnp.bfloat16

    # ---- sens_expand: complex_mul(model_image, sens) for this coil ----------- #
    mr = m_r_ref[0]
    mi = m_i_ref[0]
    sr = sens_r_ref[0, 0].astype(f32)
    si = sens_i_ref[0, 0].astype(f32)
    er = (mr * sr - mi * si).astype(bf16)
    ei = (mr * si + mi * sr).astype(bf16)

    # ---- fft2c: rows (H), then columns (W) ------------------------------------ #
    xr, xi = _gauss_dot(fh_r_ref[...], fh_i_ref[...], fh_s_ref[...],
                        er, ei, er + ei)
    xrb, xib = xr.astype(bf16), xi.astype(bf16)
    mt_r, mt_i = _gauss_dot(xrb, xib, xrb + xib,
                            fw_r_ref[...], fw_i_ref[...], fw_s_ref[...])

    # ---- soft data consistency + final combination ---------------------------- #
    kr = cur_r_ref[0, 0]
    ki = cur_i_ref[0, 0]
    mdc = mask_dcw_ref[...]                                 # (1, W), broadcasts
    out_r_ref[0, 0] = kr - mdc * (kr - ref_r_ref[0, 0]) - mt_r
    out_i_ref[0, 0] = ki - mdc * (ki - ref_i_ref[0, 0]) - mt_i


# ----------------------------------------------------------------------------- #
# Wrapper: constants, BlockSpecs, the two pallas_calls.
# ----------------------------------------------------------------------------- #
def _centered_dft_mats(n, inverse, dtype=jnp.bfloat16):
    """(real, imag, real+imag) of M with M @ x == fftshift(fft(ifftshift(x), 'ortho'))."""
    eye = jnp.eye(n, dtype=jnp.complex64)
    x = jnp.fft.ifftshift(eye, axes=0)
    x = (jnp.fft.ifft if inverse else jnp.fft.fft)(x, axis=0, norm="ortho")
    x = jnp.fft.fftshift(x, axes=0)
    r = jnp.real(x).astype(jnp.float32)
    i = jnp.imag(x).astype(jnp.float32)
    return r.astype(dtype), i.astype(dtype), (r + i).astype(dtype)


def varnet_block_forward(current_kspace, ref_kspace, mask, sens_maps,
                         dc_weight, w1, b1, w2, b2):
    B, C, H, W, _ = current_kspace.shape
    f32, bf16 = jnp.float32, jnp.bfloat16
    hid = w1.shape[1]

    # Native (B, C, H, W) real/imag planes (no coil/spatial relayout transposes).
    # TODO(synk): in a multi-cascade VarNet, hoist this split (and the final
    # stack) once across all cascades instead of per block.
    cur_r_b = current_kspace[..., 0].astype(bf16)   # FFT-path operands (bf16 MXU)
    cur_i_b = current_kspace[..., 1].astype(bf16)
    sens_r = sens_maps[..., 0].astype(bf16)
    sens_i = sens_maps[..., 1].astype(bf16)
    cur_r = current_kspace[..., 0].astype(f32)      # soft-DC arithmetic stays f32
    cur_i = current_kspace[..., 1].astype(f32)
    ref_r = ref_kspace[..., 0].astype(f32)
    ref_i = ref_kspace[..., 1].astype(f32)

    # fastMRI sampling mask is (1,1,1,W,1); fold dc_weight in (loop invariant).
    mask_dcw = (mask[0, 0, 0, :, 0].astype(f32)
                * dc_weight.astype(f32)[0]).reshape(1, W)

    # Centered (ortho) DFT matrices in bf16 + Gauss-trick sums.  For even sizes
    # these matrices are symmetric, so the column ("transposed") matrices are the
    # very same arrays -> only 6 distinct constants per pass.
    ih = _centered_dft_mats(H, inverse=True)
    fh = _centered_dft_mats(H, inverse=False)

    def _col_mats(row_mats, inverse):
        if W == H and W % 2 == 0:
            return row_mats
        return tuple(m.T for m in _centered_dft_mats(W, inverse))

    iw_r, iw_i, iw_s = _col_mats(ih, inverse=True)
    fw_r, fw_i, fw_s = _col_mats(fh, inverse=False)
    ih_r, ih_i, ih_s = ih
    fh_r, fh_i, fh_s = fh

    w1f, b1f, w2f, b2f = (p.astype(f32) for p in (w1, b1, w2, b2))

    data_spec = pl.BlockSpec((1, 1, H, W), lambda b, c: (b, c, 0, 0))
    image_spec = pl.BlockSpec((1, H, W), lambda b, c: (b, 0, 0))
    smem_spec = pl.BlockSpec(memory_space=pltpu.MemorySpace.SMEM)

    def const_spec(shape):   # grid-invariant -> single-buffered
        return pl.BlockSpec(shape, lambda b, c, _n=len(shape): (0,) * _n,
                            pipeline_mode=pl.Buffered(1))

    vmem_limit = 48 * 1024 * 1024   # explicit; leaves headroom on v7x's 64 MiB

    fft_flops = 6 * H * W * (H + W)  # one Gauss-3-mult 2-D complex transform

    # ---------------- pass 1: ifft2c + sens_reduce + regularizer --------------- #
    p1_cost = pl.CostEstimate(
        flops=B * C * (fft_flops + 12 * H * W) + B * 8 * hid * H * W,
        transcendentals=0,
        bytes_accessed=(8 * B * C * H * W               # 4 bf16 input planes
                        + 6 * (H * H + W * W)           # bf16 DFT constants
                        + 8 * B * H * W))               # 2 f32 output planes
    m_r, m_i = pl.pallas_call(
        _sens_reduce_model_kernel,
        grid=(B, C),
        in_specs=[data_spec, data_spec, data_spec, data_spec,
                  const_spec((H, H)), const_spec((H, H)), const_spec((H, H)),
                  const_spec((W, W)), const_spec((W, W)), const_spec((W, W)),
                  smem_spec, smem_spec, smem_spec, smem_spec],
        out_specs=(image_spec, image_spec),
        out_shape=(jax.ShapeDtypeStruct((B, H, W), f32),
                   jax.ShapeDtypeStruct((B, H, W), f32)),
        compiler_params=pltpu.CompilerParams(
            dimension_semantics=("parallel", "arbitrary"),
            vmem_limit_bytes=vmem_limit),
        cost_estimate=p1_cost,
    )(cur_r_b, cur_i_b, sens_r, sens_i,
      ih_r, ih_i, ih_s, iw_r, iw_i, iw_s, w1f, b1f, w2f, b2f)

    # ---------------- pass 2: sens_expand + fft2c + soft data consistency ------ #
    p2_cost = pl.CostEstimate(
        flops=B * C * (fft_flops + 20 * H * W),
        transcendentals=0,
        bytes_accessed=(4 * B * C * H * W               # sens bf16
                        + 16 * B * C * H * W            # cur/ref f32
                        + 8 * B * H * W                 # m f32
                        + 6 * (H * H + W * W)           # bf16 DFT constants
                        + 8 * B * C * H * W))           # outputs f32
    out_r, out_i = pl.pallas_call(
        _sens_expand_dc_kernel,
        grid=(B, C),
        in_specs=[image_spec, image_spec,
                  data_spec, data_spec,                  # sens
                  data_spec, data_spec,                  # current k-space
                  data_spec, data_spec,                  # reference k-space
                  const_spec((1, W)),                    # mask * dc_weight
                  const_spec((H, H)), const_spec((H, H)), const_spec((H, H)),
                  const_spec((W, W)), const_spec((W, W)), const_spec((W, W))],
        out_specs=(data_spec, data_spec),
        out_shape=(jax.ShapeDtypeStruct((B, C, H, W), f32),
                   jax.ShapeDtypeStruct((B, C, H, W), f32)),
        compiler_params=pltpu.CompilerParams(
            dimension_semantics=("parallel", "parallel"),
            vmem_limit_bytes=vmem_limit),
        cost_estimate=p2_cost,
    )(m_r, m_i, sens_r, sens_i, cur_r, cur_i, ref_r, ref_i, mask_dcw,
      fh_r, fh_i, fh_s, fw_r, fw_i, fw_s)

    # Back to fastMRI (B, C, H, W, 2) real-view layout.
    return jnp.stack([out_r, out_i], axis=-1)


# ----------------------------------------------------------------------------- #
# Pure-JAX reference (mirrors the PyTorch forward), used only for verification.
# ----------------------------------------------------------------------------- #
def _reference_forward(current_kspace, ref_kspace, mask, sens_maps,
                       dc_weight, w1, b1, w2, b2):
    def to_c(x):
        return x[..., 0] + 1j * x[..., 1]

    def to_r(x):
        return jnp.stack([jnp.real(x), jnp.imag(x)], axis=-1)

    def fft2c(x):
        x = jnp.fft.ifftshift(x, axes=(-2, -1))
        x = jnp.fft.fft2(x, norm="ortho")
        return jnp.fft.fftshift(x, axes=(-2, -1))

    def ifft2c(x):
        x = jnp.fft.ifftshift(x, axes=(-2, -1))
        x = jnp.fft.ifft2(x, norm="ortho")
        return jnp.fft.fftshift(x, axes=(-2, -1))

    cur_c, sens_c = to_c(current_kspace), to_c(sens_maps)

    # sens_reduce
    red = jnp.sum(ifft2c(cur_c) * jnp.conj(sens_c), axis=1, keepdims=True)
    feat = jnp.stack([jnp.real(red), jnp.imag(red)], axis=-1)
    h = jax.nn.relu(feat @ w1 + b1)
    m = h @ w2 + b2
    m_c = m[..., 0] + 1j * m[..., 1]

    model_term = to_r(fft2c(m_c * sens_c))
    soft_dc = jnp.where(mask, current_kspace - ref_kspace, 0.0) * dc_weight
    return current_kspace - soft_dc - model_term


# ----------------------------------------------------------------------------- #
if __name__ == "__main__":
    B, C, H, W = 2, 4, 16, 16
    HID = 8

    key = jax.random.PRNGKey(0)
    k1, k2, k3, k4, k5, k6, k7, k8 = jax.random.split(key, 8)

    current_kspace = jax.random.normal(k1, (B, C, H, W, 2), jnp.float32)
    ref_kspace = jax.random.normal(k2, (B, C, H, W, 2), jnp.float32)
    sens_maps = 0.5 * jax.random.normal(k3, (B, C, H, W, 2), jnp.float32)
    mask = jax.random.uniform(k4, (1, 1, 1, W, 1)) > 0.5          # bool sampling mask

    # Parameters: dc_weight = ones(1) as in __init__, regularizer is a small MLP.
    dc_weight = jnp.ones((1,), jnp.float32)
    w1 = 0.1 * jax.random.normal(k5, (2, HID), jnp.float32)
    b1 = 0.05 * jax.random.normal(k6, (HID,), jnp.float32)
    w2 = 0.1 * jax.random.normal(k7, (HID, 2), jnp.float32)
    b2 = 0.05 * jax.random.normal(k8, (2,), jnp.float32)

    out = varnet_block_forward(current_kspace, ref_kspace, mask, sens_maps,
                               dc_weight, w1, b1, w2, b2)
    out = jax.block_until_ready(out)

    ref = _reference_forward(current_kspace, ref_kspace, mask, sens_maps,
                             dc_weight, w1, b1, w2, b2)
    ref = jax.block_until_ready(ref)

    err = float(jnp.max(jnp.abs(out - ref)))
    scale = float(jnp.max(jnp.abs(ref)))
    assert out.shape == (B, C, H, W, 2)
    assert math.isfinite(err) and err <= 3e-2 * max(1.0, scale), \
        f"mismatch vs reference: max_abs_err={err}, scale={scale}"

    print("KERNEL_OK")
</pallas_src>

<mosaic_0001>
module attributes {stable_mosaic.version = 11 : i64} {
  func.func @_sens_reduce_model_kernel(%arg0: i32, %arg1: i32, %arg2: memref<1x1x16x16xbf16, #tpu.memory_space<vmem>>, %arg3: memref<1x1x16x16xbf16, #tpu.memory_space<vmem>>, %arg4: memref<1x1x16x16xbf16, #tpu.memory_space<vmem>>, %arg5: memref<1x1x16x16xbf16, #tpu.memory_space<vmem>>, %arg6: memref<16x16xbf16, #tpu.memory_space<vmem>>, %arg7: memref<16x16xbf16, #tpu.memory_space<vmem>>, %arg8: memref<16x16xbf16, #tpu.memory_space<vmem>>, %arg9: memref<16x16xbf16, #tpu.memory_space<vmem>>, %arg10: memref<16x16xbf16, #tpu.memory_space<vmem>>, %arg11: memref<16x16xbf16, #tpu.memory_space<vmem>>, %arg12: memref<2x8xf32, #tpu.memory_space<smem>>, %arg13: memref<8xf32, #tpu.memory_space<smem>>, %arg14: memref<8x2xf32, #tpu.memory_space<smem>>, %arg15: memref<2xf32, #tpu.memory_space<smem>>, %arg16: memref<1x16x16xf32, #tpu.memory_space<vmem>>, %arg17: memref<1x16x16xf32, #tpu.memory_space<vmem>>) attributes {dimension_semantics = [#tpu.dimension_semantics<parallel>, #tpu.dimension_semantics<arbitrary>], iteration_bounds = array<i64: 2, 4>, scalar_prefetch = 0 : i64, scratch_operands = 0 : i64, tpu.core_type = #tpu.core_type<tc>, window_params = [{transform_indices = @transform_0, window_bounds = array<i64: 1, 1, 16, 16>}, {transform_indices = @transform_1, window_bounds = array<i64: 1, 1, 16, 16>}, {transform_indices = @transform_2, window_bounds = array<i64: 1, 1, 16, 16>}, {transform_indices = @transform_3, window_bounds = array<i64: 1, 1, 16, 16>}, {pipeline_mode = #tpu.pipeline_mode<synchronous>, transform_indices = @transform_4, window_bounds = array<i64: 16, 16>}, {pipeline_mode = #tpu.pipeline_mode<synchronous>, transform_indices = @transform_5, window_bounds = array<i64: 16, 16>}, {pipeline_mode = #tpu.pipeline_mode<synchronous>, transform_indices = @transform_6, window_bounds = array<i64: 16, 16>}, {pipeline_mode = #tpu.pipeline_mode<synchronous>, transform_indices = @transform_7, window_bounds = array<i64: 16, 16>}, {pipeline_mode = #tpu.pipeline_mode<synchronous>, transform_indices = @transform_8, window_bounds = array<i64: 16, 16>}, {pipeline_mode = #tpu.pipeline_mode<synchronous>, transform_indices = @transform_9, window_bounds = array<i64: 16, 16>}, {transform_indices = @transform_10, window_bounds = array<i64: 2, 8>}, {transform_indices = @transform_11, window_bounds = array<i64: 8>}, {transform_indices = @transform_12, window_bounds = array<i64: 8, 2>}, {transform_indices = @transform_13, window_bounds = array<i64: 2>}, {transform_indices = @transform_14, window_bounds = array<i64: 1, 16, 16>}, {transform_indices = @transform_15, window_bounds = array<i64: 1, 16, 16>}]} {
    %c0_i32 = arith.constant 0 : i32
    %0 = arith.cmpi eq, %arg1, %c0_i32 : i32
    %1 = arith.extui %0 : i1 to i32
    %c0_i32_0 = arith.constant 0 : i32
    %2 = arith.cmpi ne, %1, %c0_i32_0 : i32
    scf.if %2 {
      %cst_46 = arith.constant 0.000000e+00 : f32
      %56 = vector.broadcast %cst_46 : f32 to vector<1x16x16xf32>
      %c0_47 = arith.constant 0 : index
      %c0_48 = arith.constant 0 : index
      %c0_49 = arith.constant 0 : index
      %57 = vector.load %arg16[%c0_47, %c0_48, %c0_49] : memref<1x16x16xf32, #tpu.memory_space<vmem>>, vector<1x16x16xf32>
      tpu.vector_store %arg16[%c0_47, %c0_48, %c0_49], %56 {strides = array<i32>} : memref<1x16x16xf32, #tpu.memory_space<vmem>>, vector<1x16x16xf32>,
      %cst_50 = arith.constant 0.000000e+00 : f32
      %58 = vector.broadcast %cst_50 : f32 to vector<1x16x16xf32>
      %c0_51 = arith.constant 0 : index
      %c0_52 = arith.constant 0 : index
      %c0_53 = arith.constant 0 : index
      %59 = vector.load %arg17[%c0_51, %c0_52, %c0_53] : memref<1x16x16xf32, #tpu.memory_space<vmem>>, vector<1x16x16xf32>
      tpu.vector_store %arg17[%c0_51, %c0_52, %c0_53], %58 {strides = array<i32>} : memref<1x16x16xf32, #tpu.memory_space<vmem>>, vector<1x16x16xf32>,
    } else {
    }
    %c0 = arith.constant 0 : index
    %c0_1 = arith.constant 0 : index
    %c0_2 = arith.constant 0 : index
    %c0_3 = arith.constant 0 : index
    %3 = vector.load %arg2[%c0, %c0_1, %c0_2, %c0_3] : memref<1x1x16x16xbf16, #tpu.memory_space<vmem>>, vector<1x1x16x16xbf16>
    %4 = vector.shape_cast %3 : vector<1x1x16x16xbf16> to vector<16x16xbf16>
    %c0_4 = arith.constant 0 : index
    %c0_5 = arith.constant 0 : index
    %c0_6 = arith.constant 0 : index
    %c0_7 = arith.constant 0 : index
    %5 = vector.load %arg3[%c0_4, %c0_5, %c0_6, %c0_7] : memref<1x1x16x16xbf16, #tpu.memory_space<vmem>>, vector<1x1x16x16xbf16>
    %6 = vector.shape_cast %5 : vector<1x1x16x16xbf16> to vector<16x16xbf16>
    %c0_8 = arith.constant 0 : index
    %c0_9 = arith.constant 0 : index
    %7 = vector.load %arg6[%c0_8, %c0_9] : memref<16x16xbf16, #tpu.memory_space<vmem>>, vector<16x16xbf16>
    %c0_10 = arith.constant 0 : index
    %c0_11 = arith.constant 0 : index
    %8 = vector.load %arg7[%c0_10, %c0_11] : memref<16x16xbf16, #tpu.memory_space<vmem>>, vector<16x16xbf16>
    %c0_12 = arith.constant 0 : index
    %c0_13 = arith.constant 0 : index
    %9 = vector.load %arg8[%c0_12, %c0_13] : memref<16x16xbf16, #tpu.memory_space<vmem>>, vector<16x16xbf16>
    %10 = arith.addf %4, %6 : vector<16x16xbf16>
    %cst = arith.constant dense<0.000000e+00> : vector<16x16xf32>
    %11 = tpu.matmul %7, %4, %cst {dimension_numbers = #tpu.dot_dimension_numbers<[1], [0], [0], [1], [0, 0, 1, 1], [], []>} : vector<16x16xbf16>, vector<16x16xbf16>, vector<16x16xf32> -> vector<16x16xf32>
    %cst_14 = arith.constant dense<0.000000e+00> : vector<16x16xf32>
    %12 = tpu.matmul %8, %6, %cst_14 {dimension_numbers = #tpu.dot_dimension_numbers<[1], [0], [0], [1], [0, 0, 1, 1], [], []>} : vector<16x16xbf16>, vector<16x16xbf16>, vector<16x16xf32> -> vector<16x16xf32>
    %cst_15 = arith.constant dense<0.000000e+00> : vector<16x16xf32>
    %13 = tpu.matmul %9, %10, %cst_15 {dimension_numbers = #tpu.dot_dimension_numbers<[1], [0], [0], [1], [0, 0, 1, 1], [], []>} : vector<16x16xbf16>, vector<16x16xbf16>, vector<16x16xf32> -> vector<16x16xf32>
    %14 = arith.subf %11, %12 : vector<16x16xf32>
    %15 = arith.subf %13, %11 : vector<16x16xf32>
    %16 = arith.subf %15, %12 : vector<16x16xf32>
    %17 = arith.truncf %14 : vector<16x16xf32> to vector<16x16xbf16>
    %18 = arith.truncf %16 : vector<16x16xf32> to vector<16x16xbf16>
    %19 = arith.addf %17, %18 : vector<16x16xbf16>
    %c0_16 = arith.constant 0 : index
    %c0_17 = arith.constant 0 : index
    %20 = vector.load %arg9[%c0_16, %c0_17] : memref<16x16xbf16, #tpu.memory_space<vmem>>, vector<16x16xbf16>
    %c0_18 = arith.constant 0 : index
    %c0_19 = arith.constant 0 : index
    %21 = vector.load %arg10[%c0_18, %c0_19] : memref<16x16xbf16, #tpu.memory_space<vmem>>, vector<16x16xbf16>
    %c0_20 = arith.constant 0 : index
    %c0_21 = arith.constant 0 : index
    %22 = vector.load %arg11[%c0_20, %c0_21] : memref<16x16xbf16, #tpu.memory_space<vmem>>, vector<16x16xbf16>
    %cst_22 = arith.constant dense<0.000000e+00> : vector<16x16xf32>
    %23 = tpu.matmul %17, %20, %cst_22 {dimension_numbers = #tpu.dot_dimension_numbers<[1], [0], [0], [1], [0, 0, 1, 1], [], []>} : vector<16x16xbf16>, vector<16x16xbf16>, vector<16x16xf32> -> vector<16x16xf32>
    %cst_23 = arith.constant dense<0.000000e+00> : vector<16x16xf32>
    %24 = tpu.matmul %18, %21, %cst_23 {dimension_numbers = #tpu.dot_dimension_numbers<[1], [0], [0], [1], [0, 0, 1, 1], [], []>} : vector<16x16xbf16>, vector<16x16xbf16>, vector<16x16xf32> -> vector<16x16xf32>
    %cst_24 = arith.constant dense<0.000000e+00> : vector<16x16xf32>
    %25 = tpu.matmul %19, %22, %cst_24 {dimension_numbers = #tpu.dot_dimension_numbers<[1], [0], [0], [1], [0, 0, 1, 1], [], []>} : vector<16x16xbf16>, vector<16x16xbf16>, vector<16x16xf32> -> vector<16x16xf32>
    %26 = arith.subf %23, %24 : vector<16x16xf32>
    %27 = arith.subf %25, %23 : vector<16x16xf32>
    %28 = arith.subf %27, %24 : vector<16x16xf32>
    %c0_25 = arith.constant 0 : index
    %c0_26 = arith.constant 0 : index
    %c0_27 = arith.constant 0 : index
    %c0_28 = arith.constant 0 : index
    %29 = vector.load %arg4[%c0_25, %c0_26, %c0_27, %c0_28] : memref<1x1x16x16xbf16, #tpu.memory_space<vmem>>, vector<1x1x16x16xbf16>
    %30 = vector.shape_cast %29 : vector<1x1x16x16xbf16> to vector<16x16xbf16>
    %31 = arith.extf %30 : vector<16x16xbf16> to vector<16x16xf32>
    %c0_29 = arith.constant 0 : index
    %c0_30 = arith.constant 0 : index
    %c0_31 = arith.constant 0 : index
    %c0_32 = arith.constant 0 : index
    %32 = vector.load %arg5[%c0_29, %c0_30, %c0_31, %c0_32] : memref<1x1x16x16xbf16, #tpu.memory_space<vmem>>, vector<1x1x16x16xbf16>
    %33 = vector.shape_cast %32 : vector<1x1x16x16xbf16> to vector<16x16xbf16>
    %34 = arith.extf %33 : vector<16x16xbf16> to vector<16x16xf32>
    %c0_33 = arith.constant 0 : index
    %c0_34 = arith.constant 0 : index
    %c0_35 = arith.constant 0 : index
    %35 = vector.load %arg16[%c0_33, %c0_34, %c0_35] : memref<1x16x16xf32, #tpu.memory_space<vmem>>, vector<1x16x16xf32>
    %36 = vector.shape_cast %35 : vector<1x16x16xf32> to vector<16x16xf32>
    %37 = arith.mulf %26, %31 : vector<16x16xf32>
    %38 = arith.mulf %28, %34 : vector<16x16xf32>
    %39 = arith.addf %37, %38 : vector<16x16xf32>
    %40 = arith.addf %36, %39 : vector<16x16xf32>
    %c0_36 = arith.constant 0 : index
    %c0_37 = arith.constant 0 : index
    %c0_38 = arith.constant 0 : index
    %41 = vector.load %arg16[%c0_36, %c0_37, %c0_38] : memref<1x16x16xf32, #tpu.memory_space<vmem>>, vector<1x16x16xf32>
    %42 = vector.shape_cast %41 : vector<1x16x16xf32> to vector<16x16xf32>
    %43 = vector.shape_cast %40 : vector<16x16xf32> to vector<1x16x16xf32>
    tpu.vector_store %arg16[%c0_36, %c0_37, %c0_38], %43 {strides = array<i32>} : memref<1x16x16xf32, #tpu.memory_space<vmem>>, vector<1x16x16xf32>,
    %c0_39 = arith.constant 0 : index
    %c0_40 = arith.constant 0 : index
    %c0_41 = arith.constant 0 : index
    %44 = vector.load %arg17[%c0_39, %c0_40, %c0_41] : memref<1x16x16xf32, #tpu.memory_space<vmem>>, vector<1x16x16xf32>
    %45 = vector.shape_cast %44 : vector<1x16x16xf32> to vector<16x16xf32>
    %46 = arith.mulf %28, %31 : vector<16x16xf32>
    %47 = arith.mulf %26, %34 : vector<16x16xf32>
    %48 = arith.subf %46, %47 : vector<16x16xf32>
    %49 = arith.addf %45, %48 : vector<16x16xf32>
    %c0_42 = arith.constant 0 : index
    %c0_43 = arith.constant 0 : index
    %c0_44 = arith.constant 0 : index
    %50 = vector.load %arg17[%c0_42, %c0_43, %c0_44] : memref<1x16x16xf32, #tpu.memory_space<vmem>>, vector<1x16x16xf32>
    %51 = vector.shape_cast %50 : vector<1x16x16xf32> to vector<16x16xf32>
    %52 = vector.shape_cast %49 : vector<16x16xf32> to vector<1x16x16xf32>
    tpu.vector_store %arg17[%c0_42, %c0_43, %c0_44], %52 {strides = array<i32>} : memref<1x16x16xf32, #tpu.memory_space<vmem>>, vector<1x16x16xf32>,
    %c3_i32 = arith.constant 3 : i32
    %53 = arith.cmpi eq, %arg1, %c3_i32 : i32
    %54 = arith.extui %53 : i1 to i32
    %c0_i32_45 = arith.constant 0 : i32
    %55 = arith.cmpi ne, %54, %c0_i32_45 : i32
    scf.if %55 {
      %c0_46 = arith.constant 0 : index
      %c0_47 = arith.constant 0 : index
      %c0_48 = arith.constant 0 : index
      %56 = vector.load %arg16[%c0_46, %c0_47, %c0_48] : memref<1x16x16xf32, #tpu.memory_space<vmem>>, vector<1x16x16xf32>
      %57 = vector.shape_cast %56 : vector<1x16x16xf32> to vector<16x16xf32>
      %c0_49 = arith.constant 0 : index
      %c0_50 = arith.constant 0 : index
      %c0_51 = arith.constant 0 : index
      %58 = vector.load %arg17[%c0_49, %c0_50, %c0_51] : memref<1x16x16xf32, #tpu.memory_space<vmem>>, vector<1x16x16xf32>
      %59 = vector.shape_cast %58 : vector<1x16x16xf32> to vector<16x16xf32>
      %c0_52 = arith.constant 0 : index
      %60 = memref.load %arg15[%c0_52] : memref<2xf32, #tpu.memory_space<smem>>
      %61 = vector.broadcast %60 : f32 to vector<16x16xf32>
      %c1 = arith.constant 1 : index
      %62 = memref.load %arg15[%c1] : memref<2xf32, #tpu.memory_space<smem>>
      %63 = vector.broadcast %62 : f32 to vector<16x16xf32>
      %c0_53 = arith.constant 0 : index
      %c0_54 = arith.constant 0 : index
      %64 = memref.load %arg12[%c0_53, %c0_54] : memref<2x8xf32, #tpu.memory_space<smem>>
      %65 = vector.broadcast %64 : f32 to vector<16x16xf32>
      %66 = arith.mulf %57, %65 : vector<16x16xf32>
      %c1_55 = arith.constant 1 : index
      %c0_56 = arith.constant 0 : index
      %67 = memref.load %arg12[%c1_55, %c0_56] : memref<2x8xf32, #tpu.memory_space<smem>>
      %68 = vector.broadcast %67 : f32 to vector<16x16xf32>
      %69 = arith.mulf %59, %68 : vector<16x16xf32>
      %70 = arith.addf %66, %69 : vector<16x16xf32>
      %c0_57 = arith.constant 0 : index
      %71 = memref.load %arg13[%c0_57] : memref<8xf32, #tpu.memory_space<smem>>
      %72 = vector.broadcast %71 : f32 to vector<16x16xf32>
      %73 = arith.addf %70, %72 : vector<16x16xf32>
      %cst_58 = arith.constant 0.000000e+00 : f32
      %74 = vector.broadcast %cst_58 : f32 to vector<16x16xf32>
      %75 = arith.maximumf %73, %74 : vector<16x16xf32>
      %c0_59 = arith.constant 0 : index
      %c0_60 = arith.constant 0 : index
      %76 = memref.load %arg14[%c0_59, %c0_60] : memref<8x2xf32, #tpu.memory_space<smem>>
      %77 = vector.broadcast %76 : f32 to vector<16x16xf32>
      %78 = arith.mulf %75, %77 : vector<16x16xf32>
      %79 = arith.addf %61, %78 : vector<16x16xf32>
      %c0_61 = arith.constant 0 : index
      %c1_62 = arith.constant 1 : index
      %80 = memref.load %arg14[%c0_61, %c1_62] : memref<8x2xf32, #tpu.memory_space<smem>>
      %81 = vector.broadcast %80 : f32 to vector<16x16xf32>
      %82 = arith.mulf %75, %81 : vector<16x16xf32>
      %83 = arith.addf %63, %82 : vector<16x16xf32>
      %c0_63 = arith.constant 0 : index
      %c1_64 = arith.constant 1 : index
      %84 = memref.load %arg12[%c0_63, %c1_64] : memref<2x8xf32, #tpu.memory_space<smem>>
      %85 = vector.broadcast %84 : f32 to vector<16x16xf32>
      %86 = arith.mulf %57, %85 : vector<16x16xf32>
      %c1_65 = arith.constant 1 : index
      %c1_66 = arith.constant 1 : index
      %87 = memref.load %arg12[%c1_65, %c1_66] : memref<2x8xf32, #tpu.memory_space<smem>>
      %88 = vector.broadcast %87 : f32 to vector<16x16xf32>
      %89 = arith.mulf %59, %88 : vector<16x16xf32>
      %90 = arith.addf %86, %89 : vector<16x16xf32>
      %c1_67 = arith.constant 1 : index
      %91 = memref.load %arg13[%c1_67] : memref<8xf32, #tpu.memory_space<smem>>
      %92 = vector.broadcast %91 : f32 to vector<16x16xf32>
      %93 = arith.addf %90, %92 : vector<16x16xf32>
      %cst_68 = arith.constant 0.000000e+00 : f32
      %94 = vector.broadcast %cst_68 : f32 to vector<16x16xf32>
      %95 = arith.maximumf %93, %94 : vector<16x16xf32>
      %c1_69 = arith.constant 1 : index
      %c0_70 = arith.constant 0 : index
      %96 = memref.load %arg14[%c1_69, %c0_70] : memref<8x2xf32, #tpu.memory_space<smem>>
      %97 = vector.broadcast %96 : f32 to vector<16x16xf32>
      %98 = arith.mulf %95, %97 : vector<16x16xf32>
      %99 = arith.addf %79, %98 : vector<16x16xf32>
      %c1_71 = arith.constant 1 : index
      %c1_72 = arith.constant 1 : index
      %100 = memref.load %arg14[%c1_71, %c1_72] : memref<8x2xf32, #tpu.memory_space<smem>>
      %101 = vector.broadcast %100 : f32 to vector<16x16xf32>
      %102 = arith.mulf %95, %101 : vector<16x16xf32>
      %103 = arith.addf %83, %102 : vector<16x16xf32>
      %c0_73 = arith.constant 0 : index
      %c2 = arith.constant 2 : index
      %104 = memref.load %arg12[%c0_73, %c2] : memref<2x8xf32, #tpu.memory_space<smem>>
      %105 = vector.broadcast %104 : f32 to vector<16x16xf32>
      %106 = arith.mulf %57, %105 : vector<16x16xf32>
      %c1_74 = arith.constant 1 : index
      %c2_75 = arith.constant 2 : index
      %107 = memref.load %arg12[%c1_74, %c2_75] : memref<2x8xf32, #tpu.memory_space<smem>>
      %108 = vector.broadcast %107 : f32 to vector<16x16xf32>
      %109 = arith.mulf %59, %108 : vector<16x16xf32>
      %110 = arith.addf %106, %109 : vector<16x16xf32>
      %c2_76 = arith.constant 2 : index
      %111 = memref.load %arg13[%c2_76] : memref<8xf32, #tpu.memory_space<smem>>
      %112 = vector.broadcast %111 : f32 to vector<16x16xf32>
      %113 = arith.addf %110, %112 : vector<16x16xf32>
      %cst_77 = arith.constant 0.000000e+00 : f32
      %114 = vector.broadcast %cst_77 : f32 to vector<16x16xf32>
      %115 = arith.maximumf %113, %114 : vector<16x16xf32>
      %c2_78 = arith.constant 2 : index
      %c0_79 = arith.constant 0 : index
      %116 = memref.load %arg14[%c2_78, %c0_79] : memref<8x2xf32, #tpu.memory_space<smem>>
      %117 = vector.broadcast %116 : f32 to vector<16x16xf32>
      %118 = arith.mulf %115, %117 : vector<16x16xf32>
      %119 = arith.addf %99, %118 : vector<16x16xf32>
      %c2_80 = arith.constant 2 : index
      %c1_81 = arith.constant 1 : index
      %120 = memref.load %arg14[%c2_80, %c1_81] : memref<8x2xf32, #tpu.memory_space<smem>>
      %121 = vector.broadcast %120 : f32 to vector<16x16xf32>
      %122 = arith.mulf %115, %121 : vector<16x16xf32>
      %123 = arith.addf %103, %122 : vector<16x16xf32>
      %c0_82 = arith.constant 0 : index
      %c3 = arith.constant 3 : index
      %124 = memref.load %arg12[%c0_82, %c3] : memref<2x8xf32, #tpu.memory_space<smem>>
      %125 = vector.broadcast %124 : f32 to vector<16x16xf32>
      %126 = arith.mulf %57, %125 : vector<16x16xf32>
      %c1_83 = arith.constant 1 : index
      %c3_84 = arith.constant 3 : index
      %127 = memref.load %arg12[%c1_83, %c3_84] : memref<2x8xf32, #tpu.memory_space<smem>>
      %128 = vector.broadcast %127 : f32 to vector<16x16xf32>
      %129 = arith.mulf %59, %128 : vector<16x16xf32>
      %130 = arith.addf %126, %129 : vector<16x16xf32>
      %c3_85 = arith.constant 3 : index
      %131 = memref.load %arg13[%c3_85] : memref<8xf32, #tpu.memory_space<smem>>
      %132 = vector.broadcast %131 : f32 to vector<16x16xf32>
      %133 = arith.addf %130, %132 : vector<16x16xf32>
      %cst_86 = arith.constant 0.000000e+00 : f32
      %134 = vector.broadcast %cst_86 : f32 to vector<16x16xf32>
      %135 = arith.maximumf %133, %134 : vector<16x16xf32>
      %c3_87 = arith.constant 3 : index
      %c0_88 = arith.constant 0 : index
      %136 = memref.load %arg14[%c3_87, %c0_88] : memref<8x2xf32, #tpu.memory_space<smem>>
      %137 = vector.broadcast %136 : f32 to vector<16x16xf32>
      %138 = arith.mulf %135, %137 : vector<16x16xf32>
      %139 = arith.addf %119, %138 : vector<16x16xf32>
      %c3_89 = arith.constant 3 : index
      %c1_90 = arith.constant 1 : index
      %140 = memref.load %arg14[%c3_89, %c1_90] : memref<8x2xf32, #tpu.memory_space<smem>>
      %141 = vector.broadcast %140 : f32 to vector<16x16xf32>
      %142 = arith.mulf %135, %141 : vector<16x16xf32>
      %143 = arith.addf %123, %142 : vector<16x16xf32>
      %c0_91 = arith.constant 0 : index
      %c4 = arith.constant 4 : index
      %144 = memref.load %arg12[%c0_91, %c4] : memref<2x8xf32, #tpu.memory_space<smem>>
      %145 = vector.broadcast %144 : f32 to vector<16x16xf32>
      %146 = arith.mulf %57, %145 : vector<16x16xf32>
      %c1_92 = arith.constant 1 : index
      %c4_93 = arith.constant 4 : index
      %147 = memref.load %arg12[%c1_92, %c4_93] : memref<2x8xf32, #tpu.memory_space<smem>>
      %148 = vector.broadcast %147 : f32 to vector<16x16xf32>
      %149 = arith.mulf %59, %148 : vector<16x16xf32>
      %150 = arith.addf %146, %149 : vector<16x16xf32>
      %c4_94 = arith.constant 4 : index
      %151 = memref.load %arg13[%c4_94] : memref<8xf32, #tpu.memory_space<smem>>
      %152 = vector.broadcast %151 : f32 to vector<16x16xf32>
      %153 = arith.addf %150, %152 : vector<16x16xf32>
      %cst_95 = arith.constant 0.000000e+00 : f32
      %154 = vector.broadcast %cst_95 : f32 to vector<16x16xf32>
      %155 = arith.maximumf %153, %154 : vector<16x16xf32>
      %c4_96 = arith.constant 4 : index
      %c0_97 = arith.constant 0 : index
      %156 = memref.load %arg14[%c4_96, %c0_97] : memref<8x2xf32, #tpu.memory_space<smem>>
      %157 = vector.broadcast %156 : f32 to vector<16x16xf32>
      %158 = arith.mulf %155, %157 : vector<16x16xf32>
      %159 = arith.addf %139, %158 : vector<16x16xf32>
      %c4_98 = arith.constant 4 : index
      %c1_99 = arith.constant 1 : index
      %160 = memref.load %arg14[%c4_98, %c1_99] : memref<8x2xf32, #tpu.memory_space<smem>>
      %161 = vector.broadcast %160 : f32 to vector<16x16xf32>
      %162 = arith.mulf %155, %161 : vector<16x16xf32>
      %163 = arith.addf %143, %162 : vector<16x16xf32>
      %c0_100 = arith.constant 0 : index
      %c5 = arith.constant 5 : index
      %164 = memref.load %arg12[%c0_100, %c5] : memref<2x8xf32, #tpu.memory_space<smem>>
      %165 = vector.broadcast %164 : f32 to vector<16x16xf32>
      %166 = arith.mulf %57, %165 : vector<16x16xf32>
      %c1_101 = arith.constant 1 : index
      %c5_102 = arith.constant 5 : index
      %167 = memref.load %arg12[%c1_101, %c5_102] : memref<2x8xf32, #tpu.memory_space<smem>>
      %168 = vector.broadcast %167 : f32 to vector<16x16xf32>
      %169 = arith.mulf %59, %168 : vector<16x16xf32>
      %170 = arith.addf %166, %169 : vector<16x16xf32>
      %c5_103 = arith.constant 5 : index
      %171 = memref.load %arg13[%c5_103] : memref<8xf32, #tpu.memory_space<smem>>
      %172 = vector.broadcast %171 : f32 to vector<16x16xf32>
      %173 = arith.addf %170, %172 : vector<16x16xf32>
      %cst_104 = arith.constant 0.000000e+00 : f32
      %174 = vector.broadcast %cst_104 : f32 to vector<16x16xf32>
      %175 = arith.maximumf %173, %174 : vector<16x16xf32>
      %c5_105 = arith.constant 5 : index
      %c0_106 = arith.constant 0 : index
      %176 = memref.load %arg14[%c5_105, %c0_106] : memref<8x2xf32, #tpu.memory_space<smem>>
      %177 = vector.broadcast %176 : f32 to vector<16x16xf32>
      %178 = arith.mulf %175, %177 : vector<16x16xf32>
      %179 = arith.addf %159, %178 : vector<16x16xf32>
      %c5_107 = arith.constant 5 : index
      %c1_108 = arith.constant 1 : index
      %180 = memref.load %arg14[%c5_107, %c1_108] : memref<8x2xf32, #tpu.memory_space<smem>>
      %181 = vector.broadcast %180 : f32 to vector<16x16xf32>
      %182 = arith.mulf %175, %181 : vector<16x16xf32>
      %183 = arith.addf %163, %182 : vector<16x16xf32>
      %c0_109 = arith.constant 0 : index
      %c6 = arith.constant 6 : index
      %184 = memref.load %arg12[%c0_109, %c6] : memref<2x8xf32, #tpu.memory_space<smem>>
      %185 = vector.broadcast %184 : f32 to vector<16x16xf32>
      %186 = arith.mulf %57, %185 : vector<16x16xf32>
      %c1_110 = arith.constant 1 : index
      %c6_111 = arith.constant 6 : index
      %187 = memref.load %arg12[%c1_110, %c6_111] : memref<2x8xf32, #tpu.memory_space<smem>>
      %188 = vector.broadcast %187 : f32 to vector<16x16xf32>
      %189 = arith.mulf %59, %188 : vector<16x16xf32>
      %190 = arith.addf %186, %189 : vector<16x16xf32>
      %c6_112 = arith.constant 6 : index
      %191 = memref.load %arg13[%c6_112] : memref<8xf32, #tpu.memory_space<smem>>
      %192 = vector.broadcast %191 : f32 to vector<16x16xf32>
      %193 = arith.addf %190, %192 : vector<16x16xf32>
      %cst_113 = arith.constant 0.000000e+00 : f32
      %194 = vector.broadcast %cst_113 : f32 to vector<16x16xf32>
      %195 = arith.maximumf %193, %194 : vector<16x16xf32>
      %c6_114 = arith.constant 6 : index
      %c0_115 = arith.constant 0 : index
      %196 = memref.load %arg14[%c6_114, %c0_115] : memref<8x2xf32, #tpu.memory_space<smem>>
      %197 = vector.broadcast %196 : f32 to vector<16x16xf32>
      %198 = arith.mulf %195, %197 : vector<16x16xf32>
      %199 = arith.addf %179, %198 : vector<16x16xf32>
      %c6_116 = arith.constant 6 : index
      %c1_117 = arith.constant 1 : index
      %200 = memref.load %arg14[%c6_116, %c1_117] : memref<8x2xf32, #tpu.memory_space<smem>>
      %201 = vector.broadcast %200 : f32 to vector<16x16xf32>
      %202 = arith.mulf %195, %201 : vector<16x16xf32>
      %203 = arith.addf %183, %202 : vector<16x16xf32>
      %c0_118 = arith.constant 0 : index
      %c7 = arith.constant 7 : index
      %204 = memref.load %arg12[%c0_118, %c7] : memref<2x8xf32, #tpu.memory_space<smem>>
      %205 = vector.broadcast %204 : f32 to vector<16x16xf32>
      %206 = arith.mulf %57, %205 : vector<16x16xf32>
      %c1_119 = arith.constant 1 : index
      %c7_120 = arith.constant 7 : index
      %207 = memref.load %arg12[%c1_119, %c7_120] : memref<2x8xf32, #tpu.memory_space<smem>>
      %208 = vector.broadcast %207 : f32 to vector<16x16xf32>
      %209 = arith.mulf %59, %208 : vector<16x16xf32>
      %210 = arith.addf %206, %209 : vector<16x16xf32>
      %c7_121 = arith.constant 7 : index
      %211 = memref.load %arg13[%c7_121] : memref<8xf32, #tpu.memory_space<smem>>
      %212 = vector.broadcast %211 : f32 to vector<16x16xf32>
      %213 = arith.addf %210, %212 : vector<16x16xf32>
      %cst_122 = arith.constant 0.000000e+00 : f32
      %214 = vector.broadcast %cst_122 : f32 to vector<16x16xf32>
      %215 = arith.maximumf %213, %214 : vector<16x16xf32>
      %c7_123 = arith.constant 7 : index
      %c0_124 = arith.constant 0 : index
      %216 = memref.load %arg14[%c7_123, %c0_124] : memref<8x2xf32, #tpu.memory_space<smem>>
      %217 = vector.broadcast %216 : f32 to vector<16x16xf32>
      %218 = arith.mulf %215, %217 : vector<16x16xf32>
      %219 = arith.addf %199, %218 : vector<16x16xf32>
      %c7_125 = arith.constant 7 : index
      %c1_126 = arith.constant 1 : index
      %220 = memref.load %arg14[%c7_125, %c1_126] : memref<8x2xf32, #tpu.memory_space<smem>>
      %221 = vector.broadcast %220 : f32 to vector<16x16xf32>
      %222 = arith.mulf %215, %221 : vector<16x16xf32>
      %223 = arith.addf %203, %222 : vector<16x16xf32>
      %c0_127 = arith.constant 0 : index
      %c0_128 = arith.constant 0 : index
      %c0_129 = arith.constant 0 : index
      %224 = vector.load %arg16[%c0_127, %c0_128, %c0_129] : memref<1x16x16xf32, #tpu.memory_space<vmem>>, vector<1x16x16xf32>
      %225 = vector.shape_cast %224 : vector<1x16x16xf32> to vector<16x16xf32>
      %226 = vector.shape_cast %219 : vector<16x16xf32> to vector<1x16x16xf32>
      tpu.vector_store %arg16[%c0_127, %c0_128, %c0_129], %226 {strides = array<i32>} : memref<1x16x16xf32, #tpu.memory_space<vmem>>, vector<1x16x16xf32>,
      %c0_130 = arith.constant 0 : index
      %c0_131 = arith.constant 0 : index
      %c0_132 = arith.constant 0 : index
      %227 = vector.load %arg17[%c0_130, %c0_131, %c0_132] : memref<1x16x16xf32, #tpu.memory_space<vmem>>, vector<1x16x16xf32>
      %228 = vector.shape_cast %227 : vector<1x16x16xf32> to vector<16x16xf32>
      %229 = vector.shape_cast %223 : vector<16x16xf32> to vector<1x16x16xf32>
      tpu.vector_store %arg17[%c0_130, %c0_131, %c0_132], %229 {strides = array<i32>} : memref<1x16x16xf32, #tpu.memory_space<vmem>>, vector<1x16x16xf32>,
    } else {
    }
    return
  }
  func.func @transform_0(%arg0: i32, %arg1: i32) -> (i32, i32, i32, i32) {
    %c0_i32 = arith.constant 0 : i32
    %c0_i32_0 = arith.constant 0 : i32
    %c0_i32_1 = arith.constant 0 : i32
    return %arg0, %arg1, %c0_i32, %c0_i32_0 : i32, i32, i32, i32
  }
  func.func @transform_1(%arg0: i32, %arg1: i32) -> (i32, i32, i32, i32) {
    %c0_i32 = arith.constant 0 : i32
    %c0_i32_0 = arith.constant 0 : i32
    %c0_i32_1 = arith.constant 0 : i32
    return %arg0, %arg1, %c0_i32, %c0_i32_0 : i32, i32, i32, i32
  }
  func.func @transform_2(%arg0: i32, %arg1: i32) -> (i32, i32, i32, i32) {
    %c0_i32 = arith.constant 0 : i32
    %c0_i32_0 = arith.constant 0 : i32
    %c0_i32_1 = arith.constant 0 : i32
    return %arg0, %arg1, %c0_i32, %c0_i32_0 : i32, i32, i32, i32
  }
  func.func @transform_3(%arg0: i32, %arg1: i32) -> (i32, i32, i32, i32) {
    %c0_i32 = arith.constant 0 : i32
    %c0_i32_0 = arith.constant 0 : i32
    %c0_i32_1 = arith.constant 0 : i32
    return %arg0, %arg1, %c0_i32, %c0_i32_0 : i32, i32, i32, i32
  }
  func.func @transform_4(%arg0: i32, %arg1: i32) -> (i32, i32) {
    %c0_i32 = arith.constant 0 : i32
    %c0_i32_0 = arith.constant 0 : i32
    %c0_i32_1 = arith.constant 0 : i32
    return %c0_i32, %c0_i32_0 : i32, i32
  }
  func.func @transform_5(%arg0: i32, %arg1: i32) -> (i32, i32) {
    %c0_i32 = arith.constant 0 : i32
    %c0_i32_0 = arith.constant 0 : i32
    %c0_i32_1 = arith.constant 0 : i32
    return %c0_i32, %c0_i32_0 : i32, i32
  }
  func.func @transform_6(%arg0: i32, %arg1: i32) -> (i32, i32) {
    %c0_i32 = arith.constant 0 : i32
    %c0_i32_0 = arith.constant 0 : i32
    %c0_i32_1 = arith.constant 0 : i32
    return %c0_i32, %c0_i32_0 : i32, i32
  }
  func.func @transform_7(%arg0: i32, %arg1: i32) -> (i32, i32) {
    %c0_i32 = arith.constant 0 : i32
    %c0_i32_0 = arith.constant 0 : i32
    %c0_i32_1 = arith.constant 0 : i32
    return %c0_i32, %c0_i32_0 : i32, i32
  }
  func.func @transform_8(%arg0: i32, %arg1: i32) -> (i32, i32) {
    %c0_i32 = arith.constant 0 : i32
    %c0_i32_0 = arith.constant 0 : i32
    %c0_i32_1 = arith.constant 0 : i32
    return %c0_i32, %c0_i32_0 : i32, i32
  }
  func.func @transform_9(%arg0: i32, %arg1: i32) -> (i32, i32) {
    %c0_i32 = arith.constant 0 : i32
    %c0_i32_0 = arith.constant 0 : i32
    %c0_i32_1 = arith.constant 0 : i32
    return %c0_i32, %c0_i32_0 : i32, i32
  }
  func.func @transform_10(%arg0: i32, %arg1: i32) -> (i32, i32) {
    %c0_i32 = arith.constant 0 : i32
    %c0_i32_0 = arith.constant 0 : i32
    %c0_i32_1 = arith.constant 0 : i32
    return %c0_i32, %c0_i32_0 : i32, i32
  }
  func.func @transform_11(%arg0: i32, %arg1: i32) -> i32 {
    %c0_i32 = arith.constant 0 : i32
    %c0_i32_0 = arith.constant 0 : i32
    return %c0_i32 : i32
  }
  func.func @transform_12(%arg0: i32, %arg1: i32) -> (i32, i32) {
    %c0_i32 = arith.constant 0 : i32
    %c0_i32_0 = arith.constant 0 : i32
    %c0_i32_1 = arith.constant 0 : i32
    return %c0_i32, %c0_i32_0 : i32, i32
  }
  func.func @transform_13(%arg0: i32, %arg1: i32) -> i32 {
    %c0_i32 = arith.constant 0 : i32
    %c0_i32_0 = arith.constant 0 : i32
    return %c0_i32 : i32
  }
  func.func @transform_14(%arg0: i32, %arg1: i32) -> (i32, i32, i32) {
    %c0_i32 = arith.constant 0 : i32
    %c0_i32_0 = arith.constant 0 : i32
    %c0_i32_1 = arith.constant 0 : i32
    return %arg0, %c0_i32, %c0_i32_0 : i32, i32, i32
  }
  func.func @transform_15(%arg0: i32, %arg1: i32) -> (i32, i32, i32) {
    %c0_i32 = arith.constant 0 : i32
    %c0_i32_0 = arith.constant 0 : i32
    %c0_i32_1 = arith.constant 0 : i32
    return %arg0, %c0_i32, %c0_i32_0 : i32, i32, i32
  }
}

</mosaic_0001>

<bundles_post_ra>
// kernel: tpu_custom_call.1
= control target key start
LH: loop header
LB: loop body
LE: loop exit
PB: predicated region body
PF: predicated region fallthrough
CT: control target
= control target key end

     0   :  { %s3400_s0 = inlined_call_operand.hbm [shape: bf16[2,4,16,16], index: 0, kind: input, shape index: {}]   ;;  %s3401_s1 = inlined_call_operand.hbm [shape: bf16[2,4,16,16], index: 1, kind: input, shape index: {}]   ;;  %s3402_s2 = inlined_call_operand.hbm [shape: bf16[2,4,16,16], index: 2, kind: input, shape index: {}]   ;;  %s3403_s3 = inlined_call_operand.hbm [shape: bf16[2,4,16,16], index: 3, kind: input, shape index: {}]   ;;  %s3404_s4 = inlined_call_operand.vmem [shape: bf16[16,16], index: 4, kind: input, shape index: {}]   ;;  %s3405_s5 = inlined_call_operand.vmem [shape: bf16[16,16], index: 5, kind: input, shape index: {}]   ;;  %s3406_s6 = inlined_call_operand.vmem [shape: bf16[16,16], index: 6, kind: input, shape index: {}]   ;;  %s3407_s7 = inlined_call_operand.vmem [shape: bf16[16,16], index: 7, kind: input, shape index: {}]   ;;  %s3408_s8 = inlined_call_operand.vmem [shape: bf16[16,16], index: 8, kind: input, shape index: {}]   ;;  %s3409_s9 = inlined_call_operand.hbm [shape: bf16[16,16], index: 9, kind: input, shape index: {}]   ;;  %s3410_s10 = inlined_call_operand.vmem [shape: f32[2,8], index: 10, kind: input, shape index: {}]   ;;  %s3411_s11 = inlined_call_operand.vmem [shape: f32[8], index: 11, kind: input, shape index: {}]   ;;  %s3412_s12 = inlined_call_operand.vmem [shape: f32[8,2], index: 12, kind: input, shape index: {}]   ;;  %s3413_s13 = inlined_call_operand.vmem [shape: f32[2], index: 13, kind: input, shape index: {}]   ;;  %s3414_s14 = inlined_call_operand.hbm [shape: f32[2,16,16], index: 14, kind: output, shape index: {0}]   ;;  %s3415_s15 = inlined_call_operand.hbm [shape: f32[2,16,16], index: 15, kind: output, shape index: {1}]  }
   0x1   :  { %3457 = sst [smem:[#allocation49_spill]] %s3400_s0 }
   0x2   :  { %3458 = sst [smem:[#allocation50_spill]] %s3401_s1 }
   0x3   :  { %3459 = sst [smem:[#allocation51_spill]] %s3402_s2 }
   0x4   :  { %3460 = sst [smem:[#allocation52_spill]] %s3403_s3 }
   0x5   :  { %3461 = sst [smem:[#allocation53_spill]] %s3404_s4 }
   0x6   :  { %3462 = sst [smem:[#allocation54_spill]] %s3405_s5 }
   0x7   :  { %3463 = sst [smem:[#allocation55_spill]] %s3406_s6 }
   0x8   :  { %3464 = sst [smem:[#allocation56_spill]] %s3407_s7 }
   0x9   :  { %3465 = sst [smem:[#allocation57_spill]] %s3408_s8 }
   0xa   :  { %3466 = sst [smem:[#allocation58_spill]] %s3409_s9 }
   0xb   :  { %3467 = sst [smem:[#allocation59_spill]] %s3410_s10 }
   0xc   :  { %3468 = sst [smem:[#allocation60_spill]] %s3411_s11 }
   0xd   :  { %3469 = sst [smem:[#allocation61_spill]] %s3412_s12 }
   0xe   :  { %3470 = sst [smem:[#allocation62_spill]] %s3413_s13 }
   0xf   :  { %3471 = sst [smem:[#allocation63_spill]] %s3414_s14 }
  0x10   :  { %3472 = sst [smem:[#allocation64_spill]] %s3415_s15 }
  0x11   :  { %21 = vsyncpa [#allocation3], 0 }
  0x12   :  { %23 = vsyncpa [#allocation3 + $0x1], 0 }
  0x13   :  { %24 = vsyncpa [#allocation7], 0 }
  0x14   :  { %26 = vsyncpa [#allocation7 + $0x1], 0 }
  0x15   :  { %27 = vsyncpa [#allocation10], 0 }
  0x16   :  { %29 = vsyncpa [#allocation10 + $0x1], 0 }
  0x17   :  { %30 = vsyncpa [#allocation5], 0 }
  0x18   :  { %31 = vsyncpa [#allocation14], 0 }
  0x19   :  { %32 = vsyncpa [#allocation17], 0 }
  0x1a   :  { %33 = vsyncpa [#allocation4], 0 }
  0x1b   :  { %35 = vsyncpa [#allocation4 + $0x1], 0 }
  0x1c   :  { %36 = vsyncpa [#allocation20], 0 }
  0x1d   :  { %38 = vsyncpa [#allocation20 + $0x1], 0  ;;  %s2477_s18 = smov 0   ;;  %s2479_s19 = smov 0  }
  0x1e   :  { %s2481_s20 = smov 0   ;;  %s2483_s21 = smov 0  }
  0x1f   :  { %s2485_s22 = smov 0   ;;  %s2487_s23 = smov 0  }
  0x20   :  { %s2489_s24 = smov 0   ;;  %s2491_s25 = smov 0  }
  0x21   :  { %s2493_s26 = smov 0   ;;  %s2495_s27 = smov 0  }
  0x22   :  { %s2497_s28 = smov 0  }
  0x23 LB: > { %3473 = sst [smem:[#allocation30_spill]] %s2337_s18  ;;  %s2531_s29 = sadd.s32 4294967295, %s2377_s28   ;;  %s2377_s28 = sphi %s2497_s28, %s44_s28   ;;  %s2373_s27 = sphi %s2495_s27, %s3559_s27   ;;  %s2369_s26 = sphi %s2493_s26, %s3558_s26   ;;  %s2365_s25 = sphi %s2491_s25, %s3557_s25   ;;  %s2361_s24 = sphi %s2489_s24, %s3556_s24   ;;  %s2357_s23 = sphi %s2487_s23, %s3555_s23   ;;  %s2353_s22 = sphi %s2485_s22, %s3554_s22   ;;  %s2349_s21 = sphi %s2483_s21, %s3553_s21   ;;  %s2345_s20 = sphi %s2481_s20, %s3552_s20   ;;  %s2341_s19 = sphi %s2479_s19, %s3551_s19   ;;  %s2337_s18 = sphi %s2477_s18, %s3550_s18  }
  0x24   : > { %3474 = sst [smem:[#allocation31_spill]] %s2341_s19  ;;  %s1646_s30 = sadd.s32 4294967294, %s2377_s28  }
  0x25   : > { %3475 = sst [smem:[#allocation32_spill]] %s2345_s20  ;;  %p78_p0 = scmp.ne.s32.totalorder %s2353_s22, %s2349_s21 }
  0x26   : > { %3476 = sst [smem:[#allocation33_spill]] %s2353_s22  ;;  %p3423_p1 = scmp.eq.s32.totalorder %s2531_s29, 0 }
  0x27   : > { %3477 = sst [smem:[#allocation34_spill]] %s2357_s23  ;;  %p395_p2 = scmp.ne.s32.totalorder %s2345_s20, %s2341_s19 }
  0x28   : > { %3478 = sst [smem:[#allocation35_spill]] %s2361_s24  ;;  %p396_p3 = scmp.eq.s32.totalorder %s2531_s29, 7 }
  0x29   : > { %3479 = sst [smem:[#allocation36_spill]] %s2365_s25  ;;  %p2541_p4 = por %p3423_p1, %p78_p0 }
  0x2a   : > { %3480 = sst [smem:[#allocation37_spill]] %s2369_s26  ;;  %p401_p5 = scmp.ne.s32.totalorder %s2341_s19, %s2337_s18 }
  0x2b   : > { %3481 = sst [smem:[#allocation38_spill]] %s2373_s27  ;;  %p2547_p6 = por %p396_p3, %p395_p2 }
  0x2c   : > { %3482 = sst [smem:[#allocation39_spill]] %s2377_s28  ;;  %p402_p7 = scmp.eq.s32.totalorder %s1646_s30, 7 }
  0x2d   : > { %3483 = sst [smem:[#allocation40_spill]] %s2531_s29  ;;  %p1647_p8 = scmp.ge.s32.totalorder %s2377_s28, 1 }
  0x2e   : > { %s3484_s16 = scalar_select %p2541_p4, 1, 0 }
  0x2f   : > { %s3486_s17 = scalar_select %p2547_p6, 1, 0 }
  0x30   : > { %3485 = sst [smem:[#allocation41_spill]] %s3484_s16  ;;  %p435_p9 = scmp.lt.s32.totalorder %s2377_s28, 9 }
  0x31   : > { %3487 = sst [smem:[#allocation42_spill]] %s3486_s17  ;;  %p2553_p10 = por %p402_p7, %p401_p5 }
  0x32   : > { %p2557_p11 = pnand %p1647_p8, %p435_p9  ;;  %s2379_s14 = smov [#allocation11]  }
  0x33   : > { %s3488_s15 = scalar_select %p2553_p10, 1, 0 }
  0x34   : > { %s3490_s21 = scalar_select %p2557_p11, 1, 0 }
  0x35   : > { %3489 = sst [smem:[#allocation43_spill]] %s3488_s15  ;;  %s462_s25 = sshll.u32 %s2379_s14, 4  ;;  %s463_s25 = int_to_ptr.vmem [resolvable:$true] %s462_s25 }
  0x36   : > { %p1835_p12 = pneg %p2557_p11  ;;  %s3492_s11 = sld [smem:[#allocation60_spill]] }
  0x37   : > { %s3493_s9 = sld [smem:[#allocation58_spill]] }
  0x38   : > { %p2565_p13 = pnand %p1835_p12, %p3423_p1 }
  0x3a   : > { %s3491_s18 = scalar_select %p2565_p13, 1, 0 }
  0x3b   : > { %p2582_p2 = pneg %p2565_p13 }
  0x3c   : > { %s487_s15 = sshll.u32 %s3492_s11, 4  ;;  %s2572_s15 = int_to_ptr.vmem [resolvable:$true] %s487_s15 }
  0x3d   : > { %s1991_s6 = scalar_lea.hbm %s3493_s9, 128 }
  0x3e   : > { %p1992_p0 = scmp.ne.s32.totalorder %s3493_s9, %s1991_s6  ;;  %p1998_p7 = scmp.lt.u32.totalorder %s1991_s6, %s3493_s9 }
  0x3f   : > { %s3494_s4 = scalar_select %p2582_p2, 1, 0 }
  0x40   : > { %p1994_p3 = pnand %p2582_p2, %p1992_p0 }
  0x42   : > { %p1995_p5 = pneg %p1994_p3 }
  0x44   : > { %p2000_p8 = pnand %p1998_p7, %p1995_p5 }
  0x46   : > { %2003 = shalt.err (!%p2000_p8)
}
  0x47   : > { %s2004_s7 = scalar_lea.vmem %s463_s25, 128  ;;  %p2012_p10 = scmp.lt.s32.totalorder %s463_s25, %s463_s25 }
  0x48   : > { %p2005_p9 = scmp.ne.s32.totalorder %s463_s25, %s2004_s7  ;;  %p2013_p6 = scmp.lt.s32.totalorder %s2004_s7, %s2004_s7 }
  0x4a   : > { %p2007_p12 = pnand %p2005_p9, %p2582_p2  ;;  %p2014_p4 = por %p2013_p6, %p2012_p10 }
  0x4c   : > { %p2008_p1 = pneg %p2007_p12 }
  0x4e   : > { %p2015_p11 = pnand %p2014_p4, %p2008_p1 }
  0x50   : > { %2018 = shalt.err (!%p2015_p11)
}
  0x51   : > { %s3427_s5 = smov 64   ;;  %s3429_s6 = smov 4  }
  0x52   : > { %1838 = dma.hbm_to_vmem [thread:$0]  (!%p2565_p13), %s3493_s9, 128, %s463_s25, [#allocation10], %s3427_s5, %s3427_s5, %s3429_s6  }
  0x53   : > { %s2019_s17 = scalar_lea.vmem %s2572_s15, 16  ;;  %p2027_p6 = scmp.lt.s32.totalorder %s2572_s15, %s2572_s15 }
  0x54   : > { %p2020_p0 = scmp.ne.s32.totalorder %s2572_s15, %s2019_s17  ;;  %p2028_p10 = scmp.lt.s32.totalorder %s2019_s17, %s2019_s17 }
  0x56   : > { %p2022_p1 = pnand %p2020_p0, %p2582_p2  ;;  %p2029_p11 = por %p2028_p10, %p2027_p6 }
  0x58   : > { %p2023_p4 = pneg %p2022_p1 }
  0x5a   : > { %p2030_p3 = pnand %p2029_p11, %p2023_p4 }
  0x5c   : > { %2033 = shalt.err (!%p2030_p3)
}
  0x5d   : > { %s2382_s30 = smov [#allocation13]   ;;  %s53_s25 = sadd.s32 1, %s2369_s26 }
  0x5e   : > { %1844 = dma.vmem_to_smem (!%p2565_p13), %s2572_s15, 16, %s2382_s30, [#allocation14]  }
  0x5f   : > { %p54_p5 = scmp.ge.s32.totalorder %s53_s25, 4  ;;  %s56_s7 = sadd.s32 1, %s2373_s27 }
  0x60   : > { %s65_s8 = sadd.s32 1, %s2357_s23  ;;  %p72_p7 = scmp.ne.s32.totalorder %s2357_s23, %s2353_s22 }
  0x61   : > { %s3561_s25 = smov (%p54_p5, %s53_s25), 0  ;;  %s3563_s7 = smov (!%p54_p5, %s56_s7), %s2373_s27 }
  0x62   : > { %3495 = sst [smem:[#allocation44_spill]] %s3561_s25  ;;  %s61_s14 = ssub.s32 %s2369_s26, %s3561_s25 }
  0x63   : > { %p73_p8 = scmp.eq.s32.totalorder %s2377_s28, 0  ;;  %p58_p9 = scmp.ge.s32.totalorder %s3563_s7, 2 }
  0x64   : > { %s385_s15 = sadd.s32 1, %s2345_s20  ;;  %p1876_p0 = scmp.lt.s32.totalorder %s2377_s28, 8 }
  0x65   : > { %p2622_p12 = por %p73_p8, %p72_p7  ;;  %s3565_s7 = smov (%p58_p9, %s3563_s7), 0 }
  0x66   : > { %3497 = sst [smem:[#allocation45_spill]] %s3565_s7  ;;  %s3437_s30 = sand.u32 1, %s2357_s23  }
  0x67   : > { %s1655_s5 = sshll.u32 %s2369_s26, 1  ;;  %s60_s6 = ssub.s32 %s2373_s27, %s3565_s7 }
  0x68   : > { %s2635_s9 = sshll.u32 %s3437_s30, 3  ;;  %s62_s11 = sor.u32 %s61_s14, %s60_s6 }
  0x69   : > { %p383_p1 = scmp.eq.s32.totalorder %s60_s6, 0  ;;  %p63_p4 = scmp.eq.s32.totalorder %s62_s11, 0 }
  0x6a   : > { %s1656_s25 = sshll.u32 %s2373_s27, 3  ;;  %p2648_p6 = pnand %p1876_p0, %p2622_p12 }
  0x6b   : > { %s2639_s24 = scalar_select %p383_p1, %s2345_s20, %s385_s15  }
  0x6c   : > { %s2642_s19 = scalar_select %p63_p4, %s2357_s23, %s65_s8  }
  0x6d   : > { %3498 = sst [smem:[#allocation46_spill]] %s2639_s24  ;;  %s530_s29 = sadd.s32 %s1656_s25, %s1655_s5 }
  0x6e   : > { %3499 = sst [smem:[#allocation47_spill]] %s2642_s19  ;;  %s2652_s30 = sshll.u32 %s530_s29, 6 }
  0x6f   : > { %s3500_s16 = scalar_select %p2648_p6, 1, 0 }
  0x70   : > { %s3441_s7 = sand.u32 1, %s2377_s28   ;;  %s3501_s1 = sld [smem:[#allocation50_spill]] }
  0x71   : > { %s547_s5 = scalar_lea.vmem [#allocation6], %s2635_s9  ;;  %s3502_s10 = sld [smem:[#allocation59_spill]] }
  0x72   : > { %s556_s25 = sshll.u32 %s547_s5, 4  ;;  %s2669_s17 = scalar_lea.sflag [#allocation7], %s3441_s7  ;;  %s2662_s25 = int_to_ptr.vmem [resolvable:$true] %s556_s25 }
  0x73   : > { %p2675_p11 = pneg %p2648_p6 }
  0x75   : > { %s3503_s14 = scalar_select %p2675_p11, 1, 0 }
  0x76   : > { %s2659_s11 = scalar_lea.hbm %s3501_s1, %s2652_s30  ;;  %s2039_s26 = scalar_lea.hbm %s3501_s1, 1024 }
  0x77   : > { %s2034_s27 = scalar_lea.hbm %s2659_s11, 128  ;;  %p2040_p7 = scmp.lt.u32.totalorder %s2659_s11, %s3501_s1 }
  0x78   : > { %p2035_p10 = scmp.ne.s32.totalorder %s2659_s11, %s2034_s27  ;;  %p2041_p8 = scmp.lt.u32.totalorder %s2039_s26, %s2034_s27 }
  0x79   : > { %p2043_p12 = scmp.lt.u32.totalorder %s2034_s27, %s2659_s11 }
  0x7a   : > { %p2037_p3 = pnand %p2675_p11, %p2035_p10  ;;  %p2042_p9 = por %p2041_p8, %p2040_p7 }
  0x7c   : > { %p2038_p5 = pneg %p2037_p3  ;;  %p2044_p0 = por %p2043_p12, %p2042_p9 }
  0x7e   : > { %p2045_p1 = pnand %p2044_p0, %p2038_p5 }
  0x80   : > { %2048 = shalt.err (!%p2045_p1)
}
  0x81   : > { %s2049_s7 = scalar_lea.vmem %s2662_s25, 128  ;;  %s2383_s6 = smov [#allocation6]  }
  0x82   : > { %p2050_p4 = scmp.ne.s32.totalorder %s2662_s25, %s2049_s7  ;;  %s2054_s5 = sshll.u32 %s2383_s6, 4  ;;  %s2055_s5 = int_to_ptr.vmem [resolvable:$false] %s2054_s5 }
  0x83   : > { %s2056_s8 = scalar_lea.vmem %s2055_s5, 256  ;;  %p2057_p13 = scmp.lt.s32.totalorder %s2662_s25, %s2055_s5 }
  0x84   : > { %p2052_p10 = pnand %p2050_p4, %p2675_p11  ;;  %p2058_p2 = scmp.lt.s32.totalorder %s2056_s8, %s2049_s7 }
  0x86   : > { %p2053_p3 = pneg %p2052_p10  ;;  %p2059_p7 = por %p2058_p2, %p2057_p13 }
  0x88   : > { %p2060_p8 = pnand %p2059_p7, %p2053_p3 }
  0x8a   : > { %2063 = shalt.err (!%p2060_p8)
}
  0x8b   : > { %s3504_s26 = smov 4   ;;  %s3505_s27 = smov 64  }
  0x8c   : > { %1857 = dma.hbm_to_vmem [thread:$0]  (!%p2648_p6), %s2659_s11, 128, %s2662_s25, %s2669_s17, %s3505_s27, %s3505_s27, %s3504_s26  }
  0x8d   : > { %s3506_s6 = sshll.u32 %s3502_s10, 4  ;;  %p3507_p13 = scmp.ne.s32.totalorder %s3494_s4, 0  ;;  %s477_s6 = int_to_ptr.vmem [resolvable:$true] %s3506_s6 }
  0x8e   : > { %s2064_s5 = scalar_lea.vmem %s477_s6, 32  ;;  %p2072_p12 = scmp.lt.s32.totalorder %s477_s6, %s477_s6 }
  0x8f   : > { %p2065_p5 = scmp.ne.s32.totalorder %s477_s6, %s2064_s5  ;;  %p2073_p0 = scmp.lt.s32.totalorder %s2064_s5, %s2064_s5 }
  0x91   : > { %p2067_p2 = pnand %p2065_p5, %p3507_p13  ;;  %p2074_p1 = por %p2073_p0, %p2072_p12 }
  0x93   : > { %p2068_p9 = pneg %p2067_p2 }
  0x95   : > { %p2075_p4 = pnand %p2074_p1, %p2068_p9 }
  0x97   : > { %2078 = shalt.err (!%p2075_p4)
}
  0x98   : > { %s2384_s7 = smov [#allocation12]   ;;  %p3508_p10 = scmp.ne.s32.totalorder %s3491_s18, 0 }
  0x99   : > { %s3509_s12 = sld [smem:[#allocation61_spill]]  ;;  %s3510_s13 = sld [smem:[#allocation62_spill]] }
  0x9a   : > { %1841 = dma.vmem_to_smem (!%p3508_p10), %s477_s6, 32, %s2384_s7, [#allocation5]  }
  0x9f   : > { %s498_s29 = sshll.u32 %s3509_s12, 4  ;;  %s509_s1 = sshll.u32 %s3510_s13, 4  ;;  %s499_s29 = int_to_ptr.vmem [resolvable:$true] %s498_s29  ;;  %s510_s1 = int_to_ptr.vmem [resolvable:$true] %s509_s1 }
  0xa0   : > { %s2079_s10 = scalar_lea.vmem %s499_s29, 128  ;;  %p2087_p5 = scmp.lt.s32.totalorder %s499_s29, %s499_s29 }
  0xa1   : > { %p2080_p3 = scmp.ne.s32.totalorder %s499_s29, %s2079_s10  ;;  %p2088_p2 = scmp.lt.s32.totalorder %s2079_s10, %s2079_s10 }
  0xa3   : > { %p2082_p7 = pnand %p2080_p3, %p3507_p13  ;;  %p2089_p9 = por %p2088_p2, %p2087_p5 }
  0xa5   : > { %p2083_p8 = pneg %p2082_p7 }
  0xa7   : > { %p2090_p12 = pnand %p2089_p9, %p2083_p8 }
  0xa9   : > { %2093 = shalt.err (!%p2090_p12)
}
  0xaa   : > { %s2385_s6 = smov [#allocation15]   ;;  %s2094_s5 = scalar_lea.vmem %s510_s1, 16 }
  0xab   : > { %1847 = dma.vmem_to_smem (!%p3508_p10), %s499_s29, 128, %s2385_s6, [#allocation14]  }
  0xac   : > { %p2095_p0 = scmp.ne.s32.totalorder %s510_s1, %s2094_s5  ;;  %p2102_p6 = scmp.lt.s32.totalorder %s510_s1, %s510_s1 }
  0xad   : > { %p2103_p11 = scmp.lt.s32.totalorder %s2094_s5, %s2094_s5 }
  0xae   : > { %p2097_p1 = pnand %p2095_p0, %p3507_p13 }
  0xaf   : > { %p2104_p3 = por %p2103_p11, %p2102_p6 }
  0xb0   : > { %p2098_p4 = pneg %p2097_p1 }
  0xb2   : > { %p2105_p7 = pnand %p2104_p3, %p2098_p4 }
  0xb4   : > { %2108 = shalt.err (!%p2105_p7)
}
  0xb5   : > { %s2386_s10 = smov [#allocation16]   ;;  %s3511_s0 = sld [smem:[#allocation49_spill]] }
  0xb6   : > { %1850 = dma.vmem_to_smem (!%p3508_p10), %s510_s1, 16, %s2386_s10, [#allocation17]  }
  0xb7   : > { %s524_s4 = scalar_lea.vmem [#allocation2], %s2635_s9  ;;  %s3512_s8 = sand.u32 1, %s2357_s23  }
  0xb8   : > { %s533_s29 = sshll.u32 %s524_s4, 4  ;;  %s2735_s18 = scalar_lea.sflag [#allocation3], %s3512_s8  ;;  %s2731_s29 = int_to_ptr.vmem [resolvable:$true] %s533_s29 }
  0xb9   : > { %p3513_p11 = scmp.ne.s32.totalorder %s3503_s14, 0 }
  0xbb   : > { %s2728_s25 = scalar_lea.hbm %s3511_s0, %s2652_s30  ;;  %s2114_s5 = scalar_lea.hbm %s3511_s0, 1024 }
  0xbc   : > { %s2109_s15 = scalar_lea.hbm %s2728_s25, 128  ;;  %p2115_p8 = scmp.lt.u32.totalorder %s2728_s25, %s3511_s0 }
  0xbd   : > { %p2110_p6 = scmp.ne.s32.totalorder %s2728_s25, %s2109_s15  ;;  %p2116_p5 = scmp.lt.u32.totalorder %s2114_s5, %s2109_s15 }
  0xbe   : > { %p2118_p9 = scmp.lt.u32.totalorder %s2109_s15, %s2728_s25 }
  0xbf   : > { %p2112_p13 = pnand %p2110_p6, %p3513_p11  ;;  %p2117_p2 = por %p2116_p5, %p2115_p8 }
  0xc1   : > { %p2113_p10 = pneg %p2112_p13  ;;  %p2119_p12 = por %p2118_p9, %p2117_p2 }
  0xc3   : > { %p2120_p0 = pnand %p2119_p12, %p2113_p10 }
  0xc5   : > { %2123 = shalt.err (!%p2120_p0)
}
  0xc6   : > { %s2124_s11 = scalar_lea.vmem %s2731_s29, 128  ;;  %s2387_s4 = smov [#allocation2]  }
  0xc7   : > { %p2125_p1 = scmp.ne.s32.totalorder %s2731_s29, %s2124_s11  ;;  %s2129_s8 = sshll.u32 %s2387_s4, 4  ;;  %s2130_s8 = int_to_ptr.vmem [resolvable:$false] %s2129_s8 }
  0xc8   : > { %s2131_s1 = scalar_lea.vmem %s2130_s8, 256  ;;  %p2132_p7 = scmp.lt.s32.totalorder %s2731_s29, %s2130_s8 }
  0xc9   : > { %p2127_p4 = pnand %p2125_p1, %p3513_p11  ;;  %p2133_p6 = scmp.lt.s32.totalorder %s2131_s1, %s2124_s11 }
  0xcb   : > { %p2128_p3 = pneg %p2127_p4  ;;  %p2134_p13 = por %p2133_p6, %p2132_p7 }
  0xcd   : > { %p2135_p8 = pnand %p2134_p13, %p2128_p3 }
  0xcf   : > { %2138 = shalt.err (!%p2135_p8)
}
  0xd0   : > { %p3514_p10 = scmp.ne.s32.totalorder %s3500_s16, 0  ;;  %s3515_s2 = sld [smem:[#allocation51_spill]] }
  0xd1   : > { %s570_s10 = scalar_lea.vmem [#allocation8], %s2635_s9 }
  0xd2   : > { %1854 = dma.hbm_to_vmem [thread:$0]  (!%p3514_p10), %s2728_s25, 128, %s2731_s29, %s2735_s18, %s3505_s27, %s3505_s27, %s3504_s26  }
  0xd3   : > { %s579_s7 = sshll.u32 %s570_s10, 4  ;;  %s2769_s7 = int_to_ptr.vmem [resolvable:$true] %s579_s7 }
  0xd6   : > { %s2766_s5 = scalar_lea.hbm %s3515_s2, %s2652_s30  ;;  %s2144_s29 = scalar_lea.hbm %s3515_s2, 1024 }
  0xd7   : > { %s2139_s11 = scalar_lea.hbm %s2766_s5, 128  ;;  %p2145_p12 = scmp.lt.u32.totalorder %s2766_s5, %s3515_s2 }
  0xd8   : > { %p2140_p5 = scmp.ne.s32.totalorder %s2766_s5, %s2139_s11  ;;  %p2146_p0 = scmp.lt.u32.totalorder %s2144_s29, %s2139_s11 }
  0xd9   : > { %p2148_p4 = scmp.lt.u32.totalorder %s2139_s11, %s2766_s5 }
  0xda   : > { %p2142_p2 = pnand %p2140_p5, %p3513_p11  ;;  %p2147_p1 = por %p2146_p0, %p2145_p12 }
  0xdc   : > { %p2143_p9 = pneg %p2142_p2  ;;  %p2149_p3 = por %p2148_p4, %p2147_p1 }
  0xde   : > { %p2150_p7 = pnand %p2149_p3, %p2143_p9 }
  0xe0   : > { %2153 = shalt.err (!%p2150_p7)
}
  0xe1   : > { %s2154_s1 = scalar_lea.vmem %s2769_s7, 128  ;;  %s2388_s15 = smov [#allocation8]  }
  0xe2   : > { %p2155_p6 = scmp.ne.s32.totalorder %s2769_s7, %s2154_s1  ;;  %s2159_s6 = sshll.u32 %s2388_s15, 4  ;;  %s2160_s6 = int_to_ptr.vmem [resolvable:$false] %s2159_s6 }
  0xe3   : > { %s2161_s10 = scalar_lea.vmem %s2160_s6, 256  ;;  %p2162_p5 = scmp.lt.s32.totalorder %s2769_s7, %s2160_s6 }
  0xe4   : > { %p2157_p13 = pnand %p2155_p6, %p3513_p11  ;;  %p2163_p2 = scmp.lt.s32.totalorder %s2161_s10, %s2154_s1 }
  0xe6   : > { %p2158_p8 = pneg %p2157_p13  ;;  %p2164_p12 = por %p2163_p2, %p2162_p5 }
  0xe8   : > { %p2165_p0 = pnand %p2164_p12, %p2158_p8 }
  0xea   : > { %2168 = shalt.err (!%p2165_p0)
}
  0xeb   : > { %1860 = dma.hbm_to_vmem [thread:$0]  (!%p3514_p10), %s2766_s5, 128, %s2769_s7, %s2669_s17, %s3505_s27, %s3505_s27, %s3504_s26  }
  0xec   : > { %s3516_s3 = sld [smem:[#allocation52_spill]]  ;;  %s593_s29 = scalar_lea.vmem [#allocation9], %s2635_s9 }
  0xed   : > { %s602_s18 = sshll.u32 %s593_s29, 4  ;;  %s3517_s8 = sand.u32 1, %s2377_s28   ;;  %s2803_s18 = int_to_ptr.vmem [resolvable:$true] %s602_s18 }
  0xee   : > { %s2807_s1 = scalar_lea.sflag [#allocation10], %s3517_s8 }
  0xf2   : > { %s2800_s25 = scalar_lea.hbm %s3516_s3, %s2652_s30  ;;  %s2174_s30 = scalar_lea.hbm %s3516_s3, 1024 }
  0xf3   : > { %s2169_s15 = scalar_lea.hbm %s2800_s25, 128  ;;  %p2175_p3 = scmp.lt.u32.totalorder %s2800_s25, %s3516_s3 }
  0xf4   : > { %p2170_p9 = scmp.ne.s32.totalorder %s2800_s25, %s2169_s15  ;;  %p2176_p7 = scmp.lt.u32.totalorder %s2174_s30, %s2169_s15 }
  0xf5   : > { %p2178_p13 = scmp.lt.u32.totalorder %s2169_s15, %s2800_s25 }
  0xf6   : > { %p2172_p1 = pnand %p2170_p9, %p3513_p11  ;;  %p2177_p6 = por %p2176_p7, %p2175_p3 }
  0xf8   : > { %p2173_p4 = pneg %p2172_p1  ;;  %p2179_p8 = por %p2178_p13, %p2177_p6 }
  0xfa   : > { %p2180_p5 = pnand %p2179_p8, %p2173_p4 }
  0xfc   : > { %2183 = shalt.err (!%p2180_p5)
}
  0xfd   : > { %s2184_s9 = scalar_lea.vmem %s2803_s18, 128  ;;  %s2389_s10 = smov [#allocation9]  }
  0xfe   : > { %p2185_p2 = scmp.ne.s32.totalorder %s2803_s18, %s2184_s9  ;;  %s2189_s11 = sshll.u32 %s2389_s10, 4  ;;  %s2190_s11 = int_to_ptr.vmem [resolvable:$false] %s2189_s11 }
  0xff   : > { %s2191_s4 = scalar_lea.vmem %s2190_s11, 256  ;;  %p2192_p9 = scmp.lt.s32.totalorder %s2803_s18, %s2190_s11 }
 0x100   : > { %p2187_p12 = pnand %p2185_p2, %p3513_p11  ;;  %p2193_p1 = scmp.lt.s32.totalorder %s2191_s4, %s2184_s9 }
 0x102   : > { %p2188_p0 = pneg %p2187_p12  ;;  %p2194_p3 = por %p2193_p1, %p2192_p9 }
 0x104   : > { %p2195_p7 = pnand %p2194_p3, %p2188_p0 }
 0x106   : > { %2198 = shalt.err (!%p2195_p7)
}
 0x107   : > { %1863 = dma.hbm_to_vmem [thread:$0]  (!%p3514_p10), %s2800_s25, 128, %s2803_s18, %s2807_s1, %s3505_s27, %s3505_s27, %s3504_s26  }
 0x108   : > { %p3518_p11 = scmp.ne.s32.totalorder %s3490_s21, 0 }
 0x10a   : > { %614 = sbr.rel (%p3518_p11) target bundleno = 899 (0x383), region = 76 }
 0x111   : > { %s3519_s14 = sld [smem:[#allocation41_spill]]  ;;  %s616_s29 = sand.u32 1, %s2353_s22  }
 0x112   : > { %s2837_s8 = sshll.u32 %s616_s29, 3  ;;  %s617_s15 = scalar_lea.sflag [#allocation3], %s616_s29 }
 0x113   : > { %s620_s17 = scalar_lea.vmem [#allocation2], %s2837_s8 }
 0x117   : > { %p3520_p4 = scmp.ne.s32.totalorder %s3519_s14, 0 }
 0x119   : > { %2300 = dma.done.wait (%p3520_p4), %s617_s15, 128  }
 0x11a   : > { %2302 = vsyncadd (%p3520_p4), %s617_s15, 4294967168  ;;  %s3521_s16 = sld [smem:[#allocation40_spill]]  ;;  %s629_s21 = scalar_lea.vmem [#allocation6], %s2837_s8 }
 0x120   : > { %s625_s26 = sand.u32 1, %s3521_s16  }
 0x121   : > { %s626_s27 = scalar_lea.sflag [#allocation7], %s625_s26 }
 0x122   : > { %2304 = dma.done.wait (%p3520_p4), %s626_s27, 256  }
 0x123   : > { %2306 = vsyncadd (%p3520_p4), %s626_s27, 4294967040  ;;  %s638_s25 = scalar_lea.vmem [#allocation8], %s2837_s8  ;;  %s644_s18 = scalar_lea.sflag [#allocation10], %s625_s26 }
 0x124   : > { %s647_s1 = scalar_lea.vmem [#allocation9], %s2837_s8 }
 0x125   : > { %2308 = dma.done.wait (%p3520_p4), %s644_s18, 128  }
 0x126   : > { %2310 = vsyncadd (%p3520_p4), %s644_s18, 4294967168  ;;  %p3522_p10 = scmp.eq.s32.totalorder %s3521_s16, 0 }
 0x128   : > { %2312 = dma.done.wait (%p3522_p10), [#allocation10], 128   ;;  %p3523_p6 = pmov %p3522_p10 }
 0x12a   : > { %2314 = vsyncadd (%p3523_p6), [#allocation10], 4294967168  ;;  %p3524_p13 = pmov %p3523_p6 }
 0x12b   : > { %p3525_p8 = pmov %p3523_p6 }
 0x12c   : > { %2316 = dma.done.wait (%p3524_p13), [#allocation5], 32  }
 0x12d   : > { %2318 = vsyncadd (%p3525_p8), [#allocation5], 4294967264  ;;  %p3526_p5 = pmov %p3523_p6 }
 0x12f   : > { %2320 = dma.done.wait (%p3526_p5), [#allocation14], 144   ;;  %p3527_p2 = pmov %p3526_p5 }
 0x131   : > { %2322 = vsyncadd (%p3527_p2), [#allocation14], 4294967152  ;;  %p3528_p12 = pmov %p3527_p2 }
 0x132   : > { %p3529_p0 = pmov %p3527_p2 }
 0x133   : > { %2324 = dma.done.wait (%p3528_p12), [#allocation17], 16  }
 0x134   : > { %2326 = vsyncadd (%p3529_p0), [#allocation17], 4294967280 }
 0x135   : > { %672 = sfence }
 0x136   : > { %s3530_s5 = sld [smem:[#allocation31_spill]]  ;;  %s3532_s10 = sld [smem:[#allocation35_spill]] }
 0x13c   : > { %s2873_s30 = sand.u32 1, %s3530_s5   ;;  %p1682_p9 = scmp.ne.s32.totalorder %s3532_s10, 0 }
 0x13d   : > { %3531 = sst [smem:[#allocation48_spill]] %s2873_s30  ;;  %s1680_s7 = sshll.u32 %s2873_s30, 4  ;;  %vm740_vm0 = vcmask (!%p1682_p9), 130048   ;;  %v2390_v0 = vmov (!%p1682_p9), 0.0  }
 0x13e   : > { %s2876_s6 = scalar_lea.vmem [#allocation18], %s1680_s7  ;;  %s2878_s9 = scalar_lea.vmem [#allocation19], %s1680_s7 }
 0x13f   : > { %739 = sbr.rel (%p1682_p9) target bundleno = 326 (0x146), region = 116  ;;  %741 = vst.msk [vmem:[%s2876_s6] sm:$0xff] (!%p1682_p9), %vm740_vm0, %v2390_v0  ;;  %742 = vst.msk [vmem:[%s2876_s6 + $0x8] sm:$0xff] (!%p1682_p9), %vm740_vm0, %v2390_v0 }
 0x140   : > { %743 = vst.msk [vmem:[%s2878_s9] sm:$0xff] (!%p1682_p9), %vm740_vm0, %v2390_v0  ;;  %744 = vst.msk [vmem:[%s2878_s9 + $0x8] sm:$0xff] (!%p1682_p9), %vm740_vm0, %v2390_v0 }
 0x146 PF: > { %v745_v1 = vld [vmem:[%s620_s17] sm:$0xf]  ;;  %v746_v2 = vld [vmem:[%s620_s17 + $0x4] sm:$0xf]  ;;  %v2391_v3 = vmov 0.0   ;;  %vm2392_vm1 = vmmov 0  }
 0x147   : > { %1767 = vmatprep.subr.bf16.mxu0 %v2391_v3  ;;  %1773 = vmatprep.subr.bf16.mxu1 %v2391_v3  ;;  %v1684_v4 = vcombine.low %v745_v1, %v746_v2  ;;  %v747_v5 = vld [vmem:[%s629_s21] sm:$0xf]  ;;  %v748_v6 = vld [vmem:[%s629_s21 + $0x4] sm:$0xf]  ;;  %s3533_s14 = sld [smem:[#allocation53_spill]]  ;;  %vm768_vm2 = vcmask 130048  }
 0x148   : > { %v755_v7 = vadd.bf16 %v747_v5, %v745_v1  ;;  %v756_v8 = vadd.bf16 %v748_v6, %v746_v2  ;;  %v1687_v9 = vcombine.low %v747_v5, %v748_v6  ;;  %1769 = vmatprep.mubr.msk.bf16.mxu0 %vm2392_vm1, %v2391_v3  ;;  %1775 = vmatprep.mubr.msk.bf16.mxu1 %vm2392_vm1, %v2391_v3  ;;  %s3534_s17 = sld [smem:[#allocation54_spill]]  ;;  %s3535_s27 = sld [smem:[#allocation55_spill]]  ;;  %v1989_v26 = vld [vmem:[#allocation11] sm:$0xff]   ;;  %v1752_v44 = vld [vmem:[%s647_s1] sm:$0xff]  }
 0x149   : > { %1768 = vmatpush3.bf16.msra.mxu0 %v1684_v4  ;;  %s3536_s5 = sld [smem:[#allocation56_spill]]  ;;  %s3537_s11 = sld [smem:[#allocation57_spill]]  ;;  %v1748_v42 = vld [vmem:[%s638_s25] sm:$0xff]   ;;  %v1753_v50 = vunpack.c.l.bf16 %v1752_v44  ;;  %v1754_v56 = vunpack.c.h.bf16 %v1752_v44  ;;  %v1102_v4 = vld [vmem:[%s2876_s6] sm:$0xff] }
 0x14a   : > { %1774 = vmatpush3.bf16.msra.mxu1 %v1687_v9  ;;  %v1690_v12 = vcombine.low %v755_v7, %v756_v8  ;;  %1779 = vmatprep.subr.bf16.mxu0 %v2391_v3  ;;  %v1749_v47 = vunpack.c.l.bf16 %v1748_v42  ;;  %v1750_v55 = vunpack.c.h.bf16 %v1748_v42  ;;  %v1114_v5 = vld [vmem:[%s2878_s9] sm:$0xff]  ;;  %s3538_s8 = sld [smem:[#allocation35_spill]] }
 0x14b   : > { %1785 = vmatprep.subr.bf16.mxu1 %v2391_v3 }
 0x14d   : > { %v1985_v10 = vld [vmem:[%s3533_s14] sm:$0xff]  }
 0x14e   : > { %v1986_v11 = vld [vmem:[%s3534_s17] sm:$0xff]   ;;  %1770 = vmatmul.mubr.msk.bf16.vlgmr.msra.gmra.mrb[0].mxu0 %vm768_vm2, %v1985_v10 }
 0x14f   : > { %1776 = vmatmul.mubr.msk.bf16.vlgmr.msra.gmra.mrb[0].mxu1 %vm768_vm2, %v1986_v11  ;;  %1780 = vmatpush3.bf16.msra.mxu0 %v1690_v12  ;;  %v1987_v13 = vld [vmem:[%s3535_s27] sm:$0xff]  }
 0x150   : > { %1781 = vmatprep.mubr.msk.bf16.mxu0 %vm2392_vm1, %v2391_v3  ;;  %1787 = vmatprep.mubr.msk.bf16.mxu1 %vm2392_vm1, %v2391_v3  ;;  %v1988_v14 = vld [vmem:[%s3536_s5] sm:$0xff]   ;;  %p1698_p1 = scmp.ne.s32.totalorder %s3538_s8, 3 }
 0x151   : > { %1791 = vmatprep.subr.bf16.mxu0 %v2391_v3  ;;  %1786 = vmatpush3.bf16.msra.mxu1 %v1988_v14  ;;  %v1990_v15 = vld [vmem:[%s3537_s11] sm:$0xff]   ;;  %s2937_s25 = sld [smem:[#allocation16]] (!%p1698_p1)  ;;  %s2943_s15 = sld [smem:[#allocation12 + $0x1]] (!%p1698_p1) }
 0x152   : > { %1797 = vmatprep.subr.bf16.mxu1 %v2391_v3  ;;  %v1103_v10 = vld [vmem:[%s2876_s6 + $0x8] sm:$0xff]  ;;  %s1138_s1 = sld [smem:[#allocation12]] (!%p1698_p1)  ;;  %s2945_s17 = sld [smem:[#allocation12 + $0x81]] (!%p1698_p1) }
 0x153   : > { %v1115_v11 = vld [vmem:[%s2878_s9 + $0x8] sm:$0xff]  ;;  %s1700_s4 = sld [smem:[#allocation12 + $0x80]] (!%p1698_p1)  ;;  %s2947_s16 = sld [smem:[#allocation13 + $0x1]] (!%p1698_p1) }
 0x154   : > { %s2939_s14 = sld [smem:[#allocation13]] (!%p1698_p1)  ;;  %s2954_s27 = sld [smem:[#allocation12 + $0x2]] (!%p1698_p1) }
 0x155   : > { %s2941_s29 = sld [smem:[#allocation15]] (!%p1698_p1)  ;;  %s2962_s21 = sld [smem:[#allocation12 + $0x82]] (!%p1698_p1) }
 0x156   : > { %1782 = vmatmul.mubr.msk.bf16.vlgmr.msra.gmra.mrb[4].mxu0 %vm768_vm2, %v1987_v13  ;;  %s2952_s26 = sld [smem:[#allocation15 + $0x80]] (!%p1698_p1)  ;;  %s2964_s18 = sld [smem:[#allocation13 + $0x2]] (!%p1698_p1) }
 0x157   : > { %1793 = vmatprep.mubr.msk.bf16.mxu0 %vm2392_vm1, %v2391_v3  ;;  %1792 = vmatpush3.bf16.msra.mxu0 %v1990_v15  ;;  %s2970_s5 = sld [smem:[#allocation15 + $0x100]] (!%p1698_p1)  ;;  %s2972_s7 = sld [smem:[#allocation12 + $0x3]] (!%p1698_p1) }
 0x158   : > { %s2976_s10 = sld [smem:[#allocation12 + $0x83]] (!%p1698_p1)  ;;  %s2984_s8 = sld [smem:[#allocation15 + $0x180]] (!%p1698_p1) }
 0x159   : > { %s2978_s11 = sld [smem:[#allocation13 + $0x3]] (!%p1698_p1)  ;;  %s3006_s0 = sld [smem:[#allocation12 + $0x5]] (!%p1698_p1) }
 0x15a   : > { %s3013_s2 = sld [smem:[#allocation12 + $0x85]] (!%p1698_p1)  ;;  %s3026_s12 = sld [smem:[#allocation15 + $0x280]] (!%p1698_p1) }
 0x15b   : > { %s3021_s3 = sld [smem:[#allocation13 + $0x5]] (!%p1698_p1)  ;;  %s3028_s13 = sld [smem:[#allocation12 + $0x6]] (!%p1698_p1) }
 0x15c   : > { %v1205_v42 = vstv (!%p1698_p1), %s2964_s18  ;;  %s3040_s19 = sld [smem:[#allocation12 + $0x86]] (!%p1698_p1)  ;;  %s3050_s22 = sld [smem:[#allocation15 + $0x300]] (!%p1698_p1) }
 0x15d   : > { %s3048_s23 = sld [smem:[#allocation13 + $0x6]] (!%p1698_p1)  ;;  %s3064_s24 = sld [smem:[#allocation12 + $0x7]] (!%p1698_p1) }
 0x15e   : > { %s3066_s20 = sld [smem:[#allocation12 + $0x87]] (!%p1698_p1)  ;;  %s3083_s30 = sld [smem:[#allocation15 + $0x380]] (!%p1698_p1) }
 0x15f   : > { %s3081_s28 = sld [smem:[#allocation13 + $0x7]] (!%p1698_p1) }
 0x221   : > { %v806_v16 = vpop.f32.mrb[0].mxu0 }
 0x222   : > { %v861_v17 = vpop.f32.mrb[0].mxu1  ;;  %v1771_v18 = vpop.f32.mrb[1].mxu0 }
 0x223   : > { %v923_v19 = vsub.f32 %v806_v16, %v861_v17  ;;  %v1777_v20 = vpop.f32.mrb[1].mxu1  ;;  %v809_v21 = vpop.f32.mrb[2].mxu0 }
 0x224   : > { %v864_v22 = vpop.f32.mrb[2].mxu1  ;;  %v1772_v23 = vpop.f32.mrb[3].mxu0 }
 0x225   : > { %v924_v24 = vsub.f32 %v809_v21, %v864_v22  ;;  %v1778_v25 = vpop.f32.mrb[3].mxu1  ;;  %v1139_v23 = vstv (!%p1698_p1), %s1138_s1  ;;  %s2986_s1 = sld [smem:[#allocation12 + $0x4]] (!%p1698_p1) }
 0x226   : > { %v1143_v25 = vstv (!%p1698_p1), %s1700_s4  ;;  %s2992_s4 = sld [smem:[#allocation12 + $0x84]] (!%p1698_p1) }
 0x227   : > { %v929_v27 = vpack.c.bf16 %v924_v24, %v923_v19 }
 0x229   : > { %1788 = vmatmul.mubr.msk.bf16.vlgmr.msra.gmra.mrb[4].mxu1 %vm768_vm2, %v929_v27  ;;  %v916_v28 = vpop.f32.mrb[4].mxu0 }
 0x22a   : > { %v925_v29 = vsub.f32 %v916_v28, %v806_v16  ;;  %v1783_v30 = vpop.f32.mrb[5].mxu0  ;;  %1798 = vmatpush3.bf16.msra.mxu1 %v1989_v26  ;;  %1799 = vmatprep.mubr.msk.bf16.mxu1 %vm2392_vm1, %v2391_v3  ;;  %v1149_v26 = vstv (!%p1698_p1), %s2939_s14  ;;  %s2994_s14 = sld [smem:[#allocation13 + $0x4]] (!%p1698_p1) }
 0x22b   : > { %v919_v31 = vpop.f32.mrb[6].mxu0  ;;  %v1167_v30 = vstv (!%p1698_p1), %s2943_s15  ;;  %s3004_s15 = sld [smem:[#allocation15 + $0x200]] (!%p1698_p1) }
 0x22c   : > { %v927_v32 = vsub.f32 %v925_v29, %v861_v17  ;;  %v926_v33 = vsub.f32 %v919_v31, %v809_v21  ;;  %v1784_v34 = vpop.f32.mrb[7].mxu0  ;;  %v1155_v29 = vstv (!%p1698_p1), %s2941_s29  ;;  %s3228_s29 = sld [smem:[#allocation15 + $0x281]] (!%p1698_p1) }
 0x22d   : > { %v1177_v34 = vstv (!%p1698_p1), %s2947_s16 }
 0x22e   : > { %v928_v35 = vsub.f32 %v926_v33, %v864_v22  ;;  %v1135_v22 = vstv (!%p1698_p1), %s2937_s25  ;;  %v1171_v33 = vstv (!%p1698_p1), %s2945_s17  ;;  %s3210_s25 = sld [smem:[#allocation15 + $0x181]] (!%p1698_p1) }
 0x230   : > { %v930_v36 = vpack.c.bf16 %v928_v35, %v927_v32 }
 0x232   : > { %v931_v37 = vadd.bf16 %v930_v36, %v929_v27  ;;  %1794 = vmatmul.mubr.msk.bf16.vlgmr.msra.gmra.mrb[8].mxu0 %vm768_vm2, %v930_v36 }
 0x234   : > { %1800 = vmatmul.mubr.msk.bf16.vlgmr.msra.gmra.mrb[8].mxu1 %vm768_vm2, %v931_v37 }
 0x2fc   : > { %v981_v38 = vpop.f32.mrb[4].mxu1 }
 0x2fd   : > { %v1789_v39 = vpop.f32.mrb[5].mxu1 }
 0x2fe   : > { %v984_v40 = vpop.f32.mrb[6].mxu1  ;;  %v1195_v39 = vstv (!%p1698_p1), %s2954_s27 }
 0x2ff   : > { %v1790_v41 = vpop.f32.mrb[7].mxu1 }
 0x300   : > { %v1199_v41 = vstv (!%p1698_p1), %s2962_s21 }
 0x305   : > { %v1031_v43 = vpop.f32.mrb[8].mxu0 }
 0x306   : > { %v1088_v45 = vsub.f32 %v981_v38, %v1031_v43  ;;  %v1795_v46 = vpop.f32.mrb[9].mxu0 }
 0x307   : > { %v1034_v48 = vpop.f32.mrb[10].mxu0  ;;  %v1081_v49 = vpop.f32.mrb[8].mxu1 }
 0x308   : > { %v1089_v51 = vsub.f32 %v984_v40, %v1034_v48  ;;  %v1090_v52 = vsub.f32 %v1081_v49, %v981_v38  ;;  %v1796_v53 = vpop.f32.mrb[11].mxu0  ;;  %v1801_v54 = vpop.f32.mrb[9].mxu1  ;;  %v1104_v61 = vmul.f32 %v1749_v47, %v1088_v45  ;;  %v1118_v62 = vmul.f32 %v1753_v50, %v1088_v45 }
 0x309   : > { %v1084_v57 = vpop.f32.mrb[10].mxu1  ;;  %v1183_v38 = vstv (!%p1698_p1), %s2952_s26  ;;  %v1227_v49 = vstv (!%p1698_p1), %s2976_s10 }
 0x30a   : > { %v1092_v58 = vsub.f32 %v1090_v52, %v1031_v43  ;;  %v1091_v59 = vsub.f32 %v1084_v57, %v984_v40  ;;  %v1802_v60 = vpop.f32.mrb[11].mxu1  ;;  %v1105_v2 = vmul.f32 %v1750_v55, %v1089_v51  ;;  %v1119_v3 = vmul.f32 %v1754_v56, %v1089_v51 }
 0x30b   : > { %v1239_v57 = vstv (!%p1698_p1), %s2984_s8 }
 0x30c   : > { %v1106_v63 = vmul.f32 %v1753_v50, %v1092_v58  ;;  %v1116_v0 = vmul.f32 %v1749_v47, %v1092_v58  ;;  %v1093_v1 = vsub.f32 %v1091_v59, %v1034_v48  ;;  %v1211_v47 = vstv (!%p1698_p1), %s2970_s5 }
 0x30d   : > { %v1223_v48 = vstv (!%p1698_p1), %s2972_s7  ;;  %v1233_v50 = vstv (!%p1698_p1), %s2978_s11  ;;  %v1251_v58 = vstv (!%p1698_p1), %s2986_s1  ;;  %v1255_v59 = vstv (!%p1698_p1), %s2992_s4 }
 0x30e   : > { %v1108_v6 = vadd.f32 %v1106_v63, %v1104_v61  ;;  %v1120_v7 = vsub.f32 %v1116_v0, %v1118_v62  ;;  %v1107_v8 = vmul.f32 %v1754_v56, %v1093_v1  ;;  %v1117_v9 = vmul.f32 %v1750_v55, %v1093_v1  ;;  %1129 = sbr.rel (%p1698_p1) target bundleno = 846 (0x34e), region = 120 }
 0x310   : > { %v1110_v12 = vadd.f32 %v1108_v6, %v1102_v4  ;;  %v1122_v13 = vadd.f32 %v1120_v7, %v1114_v5  ;;  %v1109_v14 = vadd.f32 %v1107_v8, %v1105_v2  ;;  %v1121_v15 = vsub.f32 %v1117_v9, %v1119_v3 }
 0x311   : > { %v1261_v2 = vstv (!%p1698_p1), %s2994_s14  ;;  %v1267_v3 = vstv (!%p1698_p1), %s3004_s15  ;;  %v1279_v7 = vstv (!%p1698_p1), %s3006_s0  ;;  %s3223_s0 = sld [smem:[#allocation15 + $0x201]] (!%p1698_p1) }
 0x312   : > { %1112 = vst.msk [vmem:[%s2876_s6] sm:$0xff] %vm768_vm2, %v1110_v12  ;;  %1124 = vst.msk [vmem:[%s2878_s9] sm:$0xff] %vm768_vm2, %v1122_v13  ;;  %v1111_v16 = vadd.f32 %v1109_v14, %v1103_v10  ;;  %v1123_v17 = vadd.f32 %v1121_v15, %v1115_v11  ;;  %v1283_v11 = vstv (!%p1698_p1), %s3013_s2  ;;  %v1289_v15 = vstv (!%p1698_p1), %s3021_s3  ;;  %s3167_s2 = sld [smem:[#allocation16 + $0x1]] (!%p1698_p1) }
 0x313   : > { %s3241_s3 = sld [smem:[#allocation15 + $0x301]] (!%p1698_p1) }
 0x314   : > { %1113 = vst.msk [vmem:[%s2876_s6 + $0x8] sm:$0xff] %vm768_vm2, %v1111_v16  ;;  %1125 = vst.msk [vmem:[%s2878_s9 + $0x8] sm:$0xff] %vm768_vm2, %v1123_v17 }
 0x319   : > { %v2950_v18 = vld [vmem:[%s2876_s6] sm:$0xff] }
 0x31a   : > { %v2960_v20 = vld [vmem:[%s2878_s9] sm:$0xff]  ;;  %v1140_v24 = vmul.f32 %v1139_v23, %v2950_v18  ;;  %v1168_v32 = vmul.f32 %v1167_v30, %v2950_v18  ;;  %v1196_v40 = vmul.f32 %v1195_v39, %v2950_v18  ;;  %v1224_v55 = vmul.f32 %v1223_v48, %v2950_v18 }
 0x31b   : > { %v2957_v19 = vld [vmem:[%s2876_s6 + $0x8] sm:$0xff]  ;;  %v1144_v28 = vmul.f32 %v1143_v25, %v2960_v20  ;;  %v1172_v37 = vmul.f32 %v1171_v33, %v2960_v20  ;;  %v1200_v46 = vmul.f32 %v1199_v41, %v2960_v20  ;;  %v1228_v56 = vmul.f32 %v1227_v49, %v2960_v20 }
 0x31c   : > { %v2967_v21 = vld [vmem:[%s2878_s9 + $0x8] sm:$0xff]  ;;  %v1141_v27 = vmul.f32 %v1139_v23, %v2957_v19  ;;  %v2997_v35 = vmul.f32 %v1167_v30, %v2957_v19  ;;  %v1252_v63 = vmul.f32 %v1251_v58, %v2950_v18  ;;  %v1256_v1 = vmul.f32 %v1255_v59, %v2960_v20 }
 0x31d   : > { %v1145_v31 = vmul.f32 %v1143_v25, %v2967_v21  ;;  %v1146_v36 = vadd.f32 %v1144_v28, %v1140_v24  ;;  %v1174_v45 = vadd.f32 %v1172_v37, %v1168_v32  ;;  %v1202_v54 = vadd.f32 %v1200_v46, %v1196_v40 }
 0x31e   : > { %v1230_v0 = vadd.f32 %v1228_v56, %v1224_v55  ;;  %v1258_v9 = vadd.f32 %v1256_v1, %v1252_v63  ;;  %v1280_v10 = vmul.f32 %v1279_v7, %v2950_v18  ;;  %v1284_v14 = vmul.f32 %v1283_v11, %v2960_v20 }
 0x31f   : > { %v1147_v43 = vadd.f32 %v1145_v31, %v1141_v27  ;;  %v3015_v44 = vadd.f32 %v1149_v26, %v1146_v36  ;;  %v3035_v53 = vadd.f32 %v1177_v34, %v1174_v45  ;;  %v3059_v62 = vadd.f32 %v1205_v42, %v1202_v54 }
 0x320   : > { %v3087_v8 = vadd.f32 %v1233_v50, %v1230_v0  ;;  %v3102_v17 = vadd.f32 %v1261_v2, %v1258_v9  ;;  %v1295_v23 = vstv %s3026_s12  ;;  %v1307_v24 = vstv %s3028_s13  ;;  %s3182_s13 = sld [smem:[#allocation15 + $0x1]] }
 0x321   : > { %v3030_v51 = vadd.f32 %v1149_v26, %v1147_v43  ;;  %v1152_v52 = vmax.f32 %v3015_v44, 0.0  ;;  %v1180_v61 = vmax.f32 %v3035_v53, 0.0  ;;  %v1208_v6 = vmax.f32 %v3059_v62, 0.0 }
 0x322   : > { %v1236_v16 = vmax.f32 %v3087_v8, 0.0  ;;  %v1286_v26 = vadd.f32 %v1284_v14, %v1280_v10  ;;  %v1308_v27 = vmul.f32 %v1307_v24, %v2950_v18  ;;  %v1311_v28 = vstv %s3040_s19  ;;  %s3192_s19 = sld [smem:[#allocation15 + $0x81]] }
 0x323   : > { %v1156_v60 = vmul.f32 %v1155_v29, %v1152_v52  ;;  %v1184_v5 = vmul.f32 %v1183_v38, %v1180_v61  ;;  %v1212_v13 = vmul.f32 %v1211_v47, %v1208_v6  ;;  %v1264_v31 = vmax.f32 %v3102_v17, 0.0 }
 0x324   : > { %v1240_v30 = vmul.f32 %v1239_v57, %v1236_v16  ;;  %v1312_v32 = vmul.f32 %v1311_v28, %v2960_v20  ;;  %v1317_v36 = vstv %s3048_s23  ;;  %v3117_v37 = vadd.f32 %v1289_v15, %v1286_v26 }
 0x325   : > { %v1158_v4 = vadd.f32 %v1156_v60, %v1135_v22  ;;  %v1323_v40 = vstv %s3050_s22  ;;  %v1335_v43 = vstv %s3064_s24  ;;  %v1339_v45 = vstv %s3066_s20  ;;  %s3208_s24 = sld [smem:[#allocation15 + $0x101]] }
 0x326   : > { %v1268_v54 = vmul.f32 %v1267_v3, %v1264_v31  ;;  %v1314_v55 = vadd.f32 %v1312_v32, %v1308_v27  ;;  %v1336_v56 = vmul.f32 %v1335_v43, %v2950_v18  ;;  %v1292_v60 = vmax.f32 %v3117_v37, 0.0  ;;  %s3252_s20 = sld [smem:[#allocation15 + $0x381]] }
 0x327   : > { %v1186_v12 = vadd.f32 %v1184_v5, %v1158_v4  ;;  %v1340_v63 = vmul.f32 %v1339_v45, %v2960_v20  ;;  %v1345_v0 = vstv %s3081_s28  ;;  %v1351_v1 = vstv %s3083_s30 }
 0x328   : > { %v3135_v5 = vadd.f32 %v1317_v36, %v1314_v55  ;;  %v1153_v9 = vmax.f32 %v3030_v51, 0.0  ;;  %v1173_v18 = vmul.f32 %v1171_v33, %v2967_v21  ;;  %v1296_v20 = vmul.f32 %v1295_v23, %v1292_v60 }
 0x329   : > { %v1214_v25 = vadd.f32 %v1212_v13, %v1186_v12  ;;  %v1342_v10 = vadd.f32 %v1340_v63, %v1336_v56  ;;  %v1197_v12 = vmul.f32 %v1195_v39, %v2957_v19  ;;  %v1201_v13 = vmul.f32 %v1199_v41, %v2967_v21 }
 0x32a   : > { %v1320_v14 = vmax.f32 %v3135_v5, 0.0  ;;  %v1157_v33 = vmul.f32 %v1155_v29, %v1153_v9  ;;  %v1225_v26 = vmul.f32 %v1223_v48, %v2957_v19  ;;  %v1229_v41 = vmul.f32 %v1227_v49, %v2967_v21 }
 0x32b   : > { %v1242_v46 = vadd.f32 %v1240_v30, %v1214_v25  ;;  %v1175_v25 = vadd.f32 %v1173_v18, %v2997_v35  ;;  %v3162_v30 = vadd.f32 %v1345_v0, %v1342_v10  ;;  %v1203_v39 = vadd.f32 %v1201_v13, %v1197_v12 }
 0x32c   : > { %v1324_v29 = vmul.f32 %v1323_v40, %v1320_v14  ;;  %v1159_v35 = vadd.f32 %v1157_v33, %v1135_v22  ;;  %v1253_v32 = vmul.f32 %v1251_v58, %v2957_v19  ;;  %v1257_v55 = vmul.f32 %v1255_v59, %v2967_v21 }
 0x32d   : > { %v1270_v4 = vadd.f32 %v1268_v54, %v1242_v46  ;;  %v3177_v48 = vadd.f32 %v1177_v34, %v1175_v25  ;;  %v1348_v49 = vmax.f32 %v3162_v30, 0.0  ;;  %v3187_v46 = vadd.f32 %v1205_v42, %v1203_v39 }
 0x32e   : > { %v1231_v54 = vadd.f32 %v1229_v41, %v1225_v26  ;;  %v1281_v58 = vmul.f32 %v1279_v7, %v2957_v19  ;;  %v1285_v56 = vmul.f32 %v1283_v11, %v2967_v21  ;;  %v1309_v18 = vmul.f32 %v1307_v24, %v2957_v19 }
 0x32f   : > { %v1298_v27 = vadd.f32 %v1296_v20, %v1270_v4  ;;  %v1181_v34 = vmax.f32 %v3177_v48, 0.0  ;;  %v1352_v42 = vmul.f32 %v1351_v1, %v1348_v49  ;;  %v1209_v63 = vmax.f32 %v3187_v46, 0.0 }
 0x330   : > { %v3206_v59 = vadd.f32 %v1233_v50, %v1231_v54  ;;  %v1259_v4 = vadd.f32 %v1257_v55, %v1253_v32  ;;  %v1287_v11 = vadd.f32 %v1285_v56, %v1281_v58  ;;  %v1313_v20 = vmul.f32 %v1311_v28, %v2967_v21 }
 0x331   : > { %v1326_v22 = vadd.f32 %v1324_v29, %v1298_v27  ;;  %v1185_v7 = vmul.f32 %v1183_v38, %v1181_v34  ;;  %v1213_v50 = vmul.f32 %v1211_v47, %v1209_v63  ;;  %v1337_v28 = vmul.f32 %v1335_v43, %v2957_v19 }
 0x332   : > { %v1237_v12 = vmax.f32 %v3206_v59, 0.0  ;;  %v1263_v13 = vadd.f32 %v1261_v2, %v1259_v4  ;;  %v1291_v24 = vadd.f32 %v1289_v15, %v1287_v11  ;;  %v1315_v33 = vadd.f32 %v1313_v20, %v1309_v18 }
 0x333   : > { %v1354_v10 = vadd.f32 %v1352_v42, %v1326_v22  ;;  %v1187_v38 = vadd.f32 %v1185_v7, %v1159_v35  ;;  %v1341_v2 = vmul.f32 %v1339_v45, %v2967_v21  ;;  %v1137_v26 = vstv %s3167_s2 }
 0x334   : > { %v1241_v47 = vmul.f32 %v1239_v57, %v1237_v12  ;;  %v1265_v25 = vmax.f32 %v1263_v13, 0.0  ;;  %v1293_v15 = vmax.f32 %v1291_v24, 0.0  ;;  %v1319_v39 = vadd.f32 %v1317_v36, %v1315_v33 }
 0x335   : > { %1362 = vst.msk [vmem:[%s2876_s6] sm:$0xff] %vm768_vm2, %v1354_v10  ;;  %v1215_v27 = vadd.f32 %v1213_v50, %v1187_v38  ;;  %v1161_v19 = vstv %s3182_s13  ;;  %v1343_v41 = vadd.f32 %v1341_v2, %v1337_v28  ;;  %v1189_v29 = vstv %s3192_s19 }
 0x336   : > { %v1269_v43 = vmul.f32 %v1267_v3, %v1265_v25  ;;  %v1162_v57 = vmul.f32 %v1161_v19, %v1152_v52  ;;  %v1297_v45 = vmul.f32 %v1295_v23, %v1293_v15  ;;  %v1321_v35 = vmax.f32 %v1319_v39, 0.0 }
 0x337   : > { %v1243_v21 = vadd.f32 %v1241_v47, %v1215_v27  ;;  %v1190_v36 = vmul.f32 %v1189_v29, %v1180_v61  ;;  %v1347_v48 = vadd.f32 %v1345_v0, %v1343_v41  ;;  %v1217_v32 = vstv %s3208_s24 }
 0x338   : > { %v1164_v3 = vadd.f32 %v1162_v57, %v1137_v26  ;;  %v1245_v44 = vstv %s3210_s25  ;;  %v1325_v54 = vmul.f32 %v1323_v40, %v1321_v35  ;;  %v1218_v23 = vmul.f32 %v1217_v32, %v1208_v6 }
 0x339   : > { %v1271_v52 = vadd.f32 %v1269_v43, %v1243_v21  ;;  %v1349_v55 = vmax.f32 %v1347_v48, 0.0  ;;  %v1246_v53 = vmul.f32 %v1245_v44, %v1236_v16  ;;  %v1273_v61 = vstv %s3223_s0 }
 0x33a   : > { %v1192_v22 = vadd.f32 %v1190_v36, %v1164_v3  ;;  %v1301_v56 = vstv %s3228_s29  ;;  %v1274_v59 = vmul.f32 %v1273_v61, %v1264_v31  ;;  %v1329_v4 = vstv %s3241_s3 }
 0x33b   : > { %v1299_v58 = vadd.f32 %v1297_v45, %v1271_v52  ;;  %v1353_v0 = vmul.f32 %v1351_v1, %v1349_v55  ;;  %v1163_v62 = vmul.f32 %v1161_v19, %v1153_v9  ;;  %v1191_v6 = vmul.f32 %v1189_v29, %v1181_v34 }
 0x33c   : > { %v1220_v42 = vadd.f32 %v1218_v23, %v1192_v22  ;;  %v1302_v8 = vmul.f32 %v1301_v56, %v1292_v60  ;;  %v1357_v11 = vstv %s3252_s20  ;;  %v1219_v1 = vmul.f32 %v1217_v32, %v1209_v63 }
 0x33d   : > { %v1327_v40 = vadd.f32 %v1325_v54, %v1299_v58  ;;  %v1165_v18 = vadd.f32 %v1163_v62, %v1137_v26  ;;  %v1330_v17 = vmul.f32 %v1329_v4, %v1320_v14  ;;  %v1247_v31 = vmul.f32 %v1245_v44, %v1237_v12 }
 0x33e   : > { %v1248_v7 = vadd.f32 %v1246_v53, %v1220_v42  ;;  %v1358_v37 = vmul.f32 %v1357_v11, %v1348_v49  ;;  %v1275_v34 = vmul.f32 %v1273_v61, %v1265_v25  ;;  %v1303_v46 = vmul.f32 %v1301_v56, %v1293_v15 }
 0x33f   : > { %v1355_v16 = vadd.f32 %v1353_v0, %v1327_v40  ;;  %v1193_v51 = vadd.f32 %v1191_v6, %v1165_v18  ;;  %v1331_v38 = vmul.f32 %v1329_v4, %v1321_v35  ;;  %v1359_v14 = vmul.f32 %v1357_v11, %v1349_v55 }
 0x340   : > { %v1276_v20 = vadd.f32 %v1274_v59, %v1248_v7 }
 0x341   : > { %1363 = vst.msk [vmem:[%s2876_s6 + $0x8] sm:$0xff] %vm768_vm2, %v1355_v16  ;;  %v1221_v60 = vadd.f32 %v1219_v1, %v1193_v51 }
 0x342   : > { %v1304_v9 = vadd.f32 %v1302_v8, %v1276_v20 }
 0x343   : > { %v1249_v50 = vadd.f32 %v1247_v31, %v1221_v60 }
 0x344   : > { %v1332_v10 = vadd.f32 %v1330_v17, %v1304_v9 }
 0x345   : > { %v1277_v13 = vadd.f32 %v1275_v34, %v1249_v50 }
 0x346   : > { %v1360_v63 = vadd.f32 %v1358_v37, %v1332_v10 }
 0x347   : > { %v1305_v5 = vadd.f32 %v1303_v46, %v1277_v13 }
 0x348   : > { %1364 = vst.msk [vmem:[%s2878_s9] sm:$0xff] %vm768_vm2, %v1360_v63 }
 0x349   : > { %v1333_v24 = vadd.f32 %v1331_v38, %v1305_v5 }
 0x34b   : > { %v1361_v33 = vadd.f32 %v1359_v14, %v1333_v24 }
 0x34d   : > { %1365 = vst.msk [vmem:[%s2878_s9 + $0x8] sm:$0xff] %vm768_vm2, %v1361_v33 }
 0x34e PF: > { %s3539_s12 = sld [smem:[#allocation36_spill]]  ;;  %s3540_s22 = sld [smem:[#allocation48_spill]] }
 0x34f   : > { %s3541_s23 = sld [smem:[#allocation42_spill]]  ;;  %s3542_s16 = sld [smem:[#allocation63_spill]] }
 0x350   : > { %s1385_s27 = sshll.u32 %s2876_s6, 4  ;;  %s2393_s5 = smov [#allocation18]   ;;  %s3297_s27 = int_to_ptr.vmem [resolvable:$true] %s1385_s27 }
 0x351   : > { %s2199_s18 = scalar_lea.vmem %s3297_s27, 256  ;;  %s2203_s7 = sshll.u32 %s2393_s5, 4  ;;  %s2204_s7 = int_to_ptr.vmem [resolvable:$false] %s2203_s7 }
 0x352   : > { %p2200_p3 = scmp.ne.s32.totalorder %s3297_s27, %s2199_s18  ;;  %s2205_s10 = scalar_lea.vmem %s2204_s7, 512 }
 0x353   : > { %p2206_p10 = scmp.lt.s32.totalorder %s3297_s27, %s2204_s7  ;;  %p2207_p6 = scmp.lt.s32.totalorder %s2205_s10, %s2199_s18 }
 0x354   : > { %s1745_s28 = sshll.u32 %s3539_s12, 8  ;;  %s1367_s21 = scalar_lea.sflag [#allocation4], %s3540_s22 }
 0x355   : > { %s3294_s26 = scalar_lea.hbm %s3542_s16, %s1745_s28  ;;  %p3543_p7 = scmp.ne.s32.totalorder %s3541_s23, 0 }
 0x356   : > { %p2208_p13 = por %p2207_p6, %p2206_p10 }
 0x357   : > { %p2201_p11 = pnand %p2200_p3, %p3543_p7 }
 0x359   : > { %p2202_p4 = pneg %p2201_p11 }
 0x35b   : > { %p2209_p8 = pnand %p2208_p13, %p2202_p4 }
 0x35d   : > { %2212 = shalt.err (!%p2209_p8)
}
 0x35e   : > { %s2213_s6 = scalar_lea.hbm %s3294_s26, 256  ;;  %s2217_s1 = scalar_lea.hbm %s3542_s16, 512 }
 0x35f   : > { %p2214_p5 = scmp.ne.s32.totalorder %s3294_s26, %s2213_s6  ;;  %p2218_p0 = scmp.lt.u32.totalorder %s3294_s26, %s3542_s16 }
 0x360   : > { %p2219_p9 = scmp.lt.u32.totalorder %s2217_s1, %s2213_s6  ;;  %p2221_p3 = scmp.lt.u32.totalorder %s2213_s6, %s3294_s26 }
 0x361   : > { %p2215_p2 = pnand %p2214_p5, %p3543_p7 }
 0x362   : > { %p2220_p1 = por %p2219_p9, %p2218_p0 }
 0x363   : > { %p2216_p12 = pneg %p2215_p2 }
 0x364   : > { %p2222_p11 = por %p2221_p3, %p2220_p1 }
 0x366   : > { %p2223_p4 = pnand %p2222_p11, %p2216_p12 }
 0x368   : > { %2226 = shalt.err (!%p2223_p4)
}
 0x369   : > { %s2394_s15 = smov 128   ;;  %s2395_s2 = smov 8  }
 0x36a   : > { %1831 = dma.vmem_to_hbm [thread:$0]  (%p3543_p7), %s3297_s27, 256, %s3294_s26, %s1367_s21, %s2394_s15, %s2394_s15, %s2395_s2  }
 0x36b   : > { %s3544_s24 = sld [smem:[#allocation64_spill]]  ;;  %s1401_s29 = sshll.u32 %s2878_s9, 4  ;;  %s3334_s29 = int_to_ptr.vmem [resolvable:$true] %s1401_s29 }
 0x36c   : > { %s1372_s3 = scalar_lea.sflag [#allocation20], %s3540_s22  ;;  %s2227_s20 = scalar_lea.vmem %s3334_s29, 256 }
 0x36d   : > { %p2228_p10 = scmp.ne.s32.totalorder %s3334_s29, %s2227_s20  ;;  %s2396_s30 = smov [#allocation19]  }
 0x36e   : > { %s2231_s17 = sshll.u32 %s2396_s30, 4  ;;  %s2232_s17 = int_to_ptr.vmem [resolvable:$false] %s2231_s17 }
 0x36f   : > { %p2229_p6 = pnand %p2228_p10, %p3543_p7  ;;  %s2233_s12 = scalar_lea.vmem %s2232_s17, 512 }
 0x370   : > { %p2234_p8 = scmp.lt.s32.totalorder %s3334_s29, %s2232_s17  ;;  %p2235_p5 = scmp.lt.s32.totalorder %s2233_s12, %s2227_s20 }
 0x371   : > { %s3545_s0 = smov %s3544_s24  ;;  %s3331_s25 = scalar_lea.hbm %s3544_s24, %s1745_s28 }
 0x372   : > { %p2230_p13 = pneg %p2229_p6  ;;  %p2236_p2 = por %p2235_p5, %p2234_p8 }
 0x374   : > { %p2237_p12 = pnand %p2236_p2, %p2230_p13 }
 0x376   : > { %2240 = shalt.err (!%p2237_p12)
}
 0x377   : > { %s2241_s9 = scalar_lea.hbm %s3331_s25, 256  ;;  %s2245_s27 = scalar_lea.hbm %s3545_s0, 512 }
 0x378   : > { %p2242_p0 = scmp.ne.s32.totalorder %s3331_s25, %s2241_s9  ;;  %p2246_p3 = scmp.lt.u32.totalorder %s3331_s25, %s3545_s0 }
 0x379   : > { %p2247_p11 = scmp.lt.u32.totalorder %s2245_s27, %s2241_s9  ;;  %p2249_p10 = scmp.lt.u32.totalorder %s2241_s9, %s3331_s25 }
 0x37a   : > { %p2243_p9 = pnand %p2242_p0, %p3543_p7 }
 0x37b   : > { %p2248_p4 = por %p2247_p11, %p2246_p3 }
 0x37c   : > { %p2244_p1 = pneg %p2243_p9 }
 0x37d   : > { %p2250_p6 = por %p2249_p10, %p2248_p4 }
 0x37f   : > { %p2251_p13 = pnand %p2250_p6, %p2244_p1 }
 0x381   : > { %2254 = shalt.err (!%p2251_p13)
}
 0x382   : > { %1832 = dma.vmem_to_hbm [thread:$0]  (%p3543_p7), %s3334_s29, 256, %s3331_s25, %s1372_s3, %s2394_s15, %s2394_s15, %s2395_s2  }
 0x383 PF: > { %s3546_s5 = sld [smem:[#allocation39_spill]]  ;;  %s3547_s7 = sld [smem:[#allocation30_spill]] }
 0x384   : > { %s3548_s10 = sld [smem:[#allocation43_spill]] }
 0x389   : > { %p1882_p8 = scmp.ge.s32.totalorder %s3546_s5, 2  ;;  %s1416_s6 = sand.u32 1, %s3547_s7  }
 0x38a   : > { %p3549_p5 = scmp.ne.s32.totalorder %s3548_s10, 0  ;;  %s1417_s11 = scalar_lea.sflag [#allocation4], %s1416_s6 }
 0x38c   : > { %p1865_p2 = pnand %p1882_p8, %p3549_p5 }
 0x38e   : > { %2328 = dma.done.wait (!%p1865_p2), %s1417_s11, 256  }
 0x38f   : > { %2330 = vsyncadd (!%p1865_p2), %s1417_s11, 4294967040  ;;  %s1426_s23 = scalar_lea.sflag [#allocation20], %s1416_s6 }
 0x390   : > { %2332 = dma.done.wait (!%p1865_p2), %s1426_s23, 256  }
 0x391   : > { %2334 = vsyncadd (!%p1865_p2), %s1426_s23, 4294967040  ;;  %s44_s28 = sadd.s32 1, %s3546_s5   ;;  %s3550_s18 = sld [smem:[#allocation31_spill]] }
 0x392   : > { %p41_p12 = scmp.ge.s32.totalorder %s44_s28, 10   ;;  %s3551_s19 = sld [smem:[#allocation32_spill]] }
 0x393   : > { %s3552_s20 = sld [smem:[#allocation46_spill]]  ;;  %s3553_s21 = sld [smem:[#allocation33_spill]] }
 0x394   : > { %s3554_s22 = sld [smem:[#allocation34_spill]]  ;;  %s3555_s23 = sld [smem:[#allocation47_spill]] }
 0x395   : > { %s3556_s24 = sld [smem:[#allocation37_spill]]  ;;  %s3557_s25 = sld [smem:[#allocation38_spill]] }
 0x396   : > { %s3558_s26 = sld [smem:[#allocation44_spill]]  ;;  %s3559_s27 = sld [smem:[#allocation45_spill]] }
 0x397   :  { %43 = sbr.rel (!%p41_p12) target bundleno = 35 (0x23), region = 204 }
 0x39e   :  { %1431 = vsyncpa [#allocation3], 1 }
 0x39f   :  { %1433 = vsyncpa [#allocation3 + $0x1], 1 }
 0x3a0   :  { %1434 = vsyncpa [#allocation7], 1 }
 0x3a1   :  { %1436 = vsyncpa [#allocation7 + $0x1], 1 }
 0x3a2   :  { %1437 = vsyncpa [#allocation10], 1 }
 0x3a3   :  { %1439 = vsyncpa [#allocation10 + $0x1], 1 }
 0x3a4   :  { %1440 = vsyncpa [#allocation4], 1 }
 0x3a5   :  { %1442 = vsyncpa [#allocation4 + $0x1], 1 }
 0x3a6   :  { %1443 = vsyncpa [#allocation20], 1 }
 0x3a7   :  { %1445 = vsyncpa [#allocation20 + $0x1], 1 }
 0x3a8   :  { %1446 = vsyncpa [#allocation5], 1 }
 0x3a9   :  { %1448 = vsyncpa [#allocation5 + $0x1], 1 }
 0x3aa   :  { %1449 = vsyncpa [#allocation14], 1 }
 0x3ab   :  { %1450 = vsyncpa [#allocation17], 1 }

</bundles_post_ra>
